<compile_context>
chip_gen: v6e
topology: v6e:2x2x1
jax: 0.10.0
libtpu: 0.0.40
codegen_flags: <defaults>
</compile_context>

<pallas_src>
import functools

import jax
import jax.numpy as jnp
from jax.experimental import pallas as pl
from jax.experimental.pallas import tpu as pltpu  # noqa: F401  (CompilerParams when tiled)


# --------------------------------------------------------------------------
# Fused forward kernel (single invocation, everything VMEM-resident)
# --------------------------------------------------------------------------

def _fused_forward_kernel(
    # inputs
    ufea_ref, vfea_ref, uv_ref, vu_ref,
    wu_ref, wv_ref, wpu_ref, wpv_ref,
    au_ref, av_ref, wou_ref, wov_ref,
    # outputs
    learn_u_ref, learn_v_ref, hu_fin_ref, hv_fin_ref,
    alpha_u_ref, alpha_v_ref, hu_all_ref, hv_all_ref,
    *, num_layers):
    f32 = jnp.float32
    bf16 = jnp.bfloat16

    # Adjacency cast to bf16 once (MXU operands bf16, f32 accumulate).
    uv_bf = uv_ref[...].astype(bf16)
    vu_bf = vu_ref[...].astype(bf16)

    # --- encoders: user0 = relu(ufea @ W_u), item0 = relu(vfea @ W_v) ---
    user0 = jnp.maximum(
        jnp.dot(ufea_ref[...].astype(bf16), wu_ref[...].astype(bf16),
                preferred_element_type=f32), 0.0)
    item0 = jnp.maximum(
        jnp.dot(vfea_ref[...].astype(bf16), wv_ref[...].astype(bf16),
                preferred_element_type=f32), 0.0)
    # Store each layer embedding the moment it is produced (lane/sublane-dense
    # (N, hid) slab per layer; keeps live activations to just the current pair).
    hu_all_ref[0] = user0.astype(hu_all_ref.dtype)
    hv_all_ref[0] = item0.astype(hv_all_ref.dtype)

    # --- L propagation layers (statically unrolled; weights stay in VMEM) ---
    u_prev, v_prev = user0, item0
    for l in range(num_layers):
        wpu_bf = wpu_ref[l].astype(bf16)                    # (hd, hd)
        wpv_bf = wpv_ref[l].astype(bf16)                    # (hd, hd)
        # u <- relu(UV @ (item @ Wp_u)),  v <- relu(VU @ (user @ Wp_v))
        u_next = jnp.maximum(
            jnp.dot(uv_bf,
                    jnp.dot(v_prev.astype(bf16), wpu_bf,
                            preferred_element_type=f32).astype(bf16),
                    preferred_element_type=f32), 0.0)
        v_next = jnp.maximum(
            jnp.dot(vu_bf,
                    jnp.dot(u_prev.astype(bf16), wpv_bf,
                            preferred_element_type=f32).astype(bf16),
                    preferred_element_type=f32), 0.0)
        hu_all_ref[l + 1] = u_next.astype(hu_all_ref.dtype)
        hv_all_ref[l + 1] = v_next.astype(hv_all_ref.dtype)
        u_prev, v_prev = u_next, v_next

    # --- per-node layer attention + output projection, fully on-VPU/EUP/MXU ---
    def layer_attention(h_all_ref, a_row, alpha_ref, hf_ref, w_out, learn_ref):
        # Pass 1: per-layer (N,1) score columns (VPU mul + lane reduce), pairwise max.
        scores = []
        for l in range(num_layers + 1):
            h = h_all_ref[l].astype(f32)                    # re-load from VMEM ref
            scores.append(jnp.sum(h * a_row, axis=-1, keepdims=True))   # (N, 1)
        m = scores[0]
        for s in scores[1:]:
            m = jnp.maximum(m, s)
        # Pass 2: exp, denominator, weighted-sum accumulation — all lane-aligned
        # (N,1)/(N,hid) VPU ops; no (N, L+1) concatenate in the hot path.
        es = []
        denom = None
        hf = None
        for l in range(num_layers + 1):
            e = jnp.exp(scores[l] - m)                      # (N, 1) EUP
            es.append(e)
            denom = e if denom is None else denom + e
            contrib = e * h_all_ref[l].astype(f32)          # (N, hid)
            hf = contrib if hf is None else hf + contrib
        inv = pl.reciprocal(denom, approx=True)             # single EUP recip
        hf = hf * inv
        hf_ref[...] = hf.astype(hf_ref.dtype)
        # Small (N, L+1) alpha output formed only once, at the end.
        alpha_ref[...] = (jnp.concatenate(es, axis=-1) * inv).astype(alpha_ref.dtype)
        # Output projection: tanh(h_final @ W_out)  (bf16 MXU, f32 acc).
        learn_ref[...] = jnp.tanh(
            jnp.dot(hf.astype(bf16), w_out.astype(bf16), preferred_element_type=f32)
        ).astype(learn_ref.dtype)

    layer_attention(hu_all_ref, au_ref[...], alpha_u_ref, hu_fin_ref,
                    wou_ref[...], learn_u_ref)
    layer_attention(hv_all_ref, av_ref[...], alpha_v_ref, hv_fin_ref,
                    wov_ref[...], learn_v_ref)


def _full_spec(shape):
    # single full-array block, grid=() -> data is DMA'd into VMEM exactly once
    return pl.BlockSpec(shape, lambda *_: (0,) * len(shape))


def evenodd_forward(ufea, vfea, UV_adj, VU_adj,
                    W_u, W_v, Wp_u, Wp_v, att_u, att_v, W_out_u, W_out_v):
    """Fused forward. Shapes:
      ufea (Nu,fd), vfea (Ni,fd), UV_adj (Nu,Ni), VU_adj (Ni,Nu),
      W_u/W_v (fd,hd), Wp_u/Wp_v (L,hd,hd), att_u/att_v (1,hd),
      W_out_u/W_out_v (hd,hd).
    """
    Nu, fd = ufea.shape
    Ni, _ = vfea.shape
    L, hd, _ = Wp_u.shape
    f32 = jnp.float32

    out_shapes = (
        jax.ShapeDtypeStruct((Nu, hd), f32),          # learn_user
        jax.ShapeDtypeStruct((Ni, hd), f32),          # learn_item
        jax.ShapeDtypeStruct((Nu, hd), f32),          # h_u_final
        jax.ShapeDtypeStruct((Ni, hd), f32),          # h_v_final
        jax.ShapeDtypeStruct((Nu, L + 1), f32),       # alpha_ul
        jax.ShapeDtypeStruct((Ni, L + 1), f32),       # alpha_vl
        jax.ShapeDtypeStruct((L + 1, Nu, hd), f32),   # Hu slab (lane-dense per layer)
        jax.ShapeDtypeStruct((L + 1, Ni, hd), f32),   # Hv slab (lane-dense per layer)
    )
    in_specs = [
        _full_spec((Nu, fd)), _full_spec((Ni, fd)),
        _full_spec((Nu, Ni)), _full_spec((Ni, Nu)),
        _full_spec((fd, hd)), _full_spec((fd, hd)),
        _full_spec((L, hd, hd)), _full_spec((L, hd, hd)),
        _full_spec((1, hd)), _full_spec((1, hd)),
        _full_spec((hd, hd)), _full_spec((hd, hd)),
    ]
    out_specs = (
        _full_spec((Nu, hd)), _full_spec((Ni, hd)),
        _full_spec((Nu, hd)), _full_spec((Ni, hd)),
        _full_spec((Nu, L + 1)), _full_spec((Ni, L + 1)),
        _full_spec((L + 1, Nu, hd)), _full_spec((L + 1, Ni, hd)),
    )
    (learn_user, learn_item, h_u_final, h_v_final,
     alpha_ul, alpha_vl, Hu_slab, Hv_slab) = pl.pallas_call(
        functools.partial(_fused_forward_kernel, num_layers=L),
        out_shape=out_shapes,
        in_specs=in_specs,
        out_specs=out_specs,
    )(ufea, vfea, UV_adj, VU_adj,
      W_u, W_v, Wp_u, Wp_v, att_u, att_v, W_out_u, W_out_v)

    # Wrapper-side layout plumbing (free relative to kernel cost):
    #  * user0 / item0 are the first layer slabs (no redundant kernel stores).
    #  * Hu / Hv transposed to the module's (N, L+1, hid) layout.
    user0 = Hu_slab[0]
    item0 = Hv_slab[0]
    Hu = jnp.transpose(Hu_slab, (1, 0, 2))
    Hv = jnp.transpose(Hv_slab, (1, 0, 2))
    return (learn_user, learn_item, h_u_final, h_v_final,
            user0, item0, alpha_ul, alpha_vl, Hu, Hv)


# --------------------------------------------------------------------------
# Model: parameters + forward (everything heavy runs in the fused kernel)
# --------------------------------------------------------------------------

class EvenOddMLPallas:
    def __init__(self, opt, key):
        self.opt = opt
        fd = opt["feature_dim"]
        hd = opt["hidden_dim"]
        L = opt["num_layers"]
        keys = jax.random.split(key, 10)
        scale = 0.1
        # embeddings exist on the torch module but are not used in forward()
        self.user_embedding = scale * jax.random.normal(
            keys[0], (opt["number_user"], fd), jnp.float32)
        self.item_embedding = scale * jax.random.normal(
            keys[1], (opt["number_item"], fd), jnp.float32)
        # encoder weights
        self.W_u = scale * jax.random.normal(keys[2], (fd, hd), jnp.float32)
        self.W_v = scale * jax.random.normal(keys[3], (fd, hd), jnp.float32)
        # per-layer propagation weights, stacked -> single kernel input each
        self.Wp_u = scale * jax.random.normal(keys[4], (L, hd, hd), jnp.float32)
        self.Wp_v = scale * jax.random.normal(keys[5], (L, hd, hd), jnp.float32)
        # layer-attention vectors (row vectors: lane-dense broadcast in-kernel)
        self.att_u = scale * jax.random.normal(keys[6], (1, hd), jnp.float32)
        self.att_v = scale * jax.random.normal(keys[7], (1, hd), jnp.float32)
        # output projections
        self.W_out_u = scale * jax.random.normal(keys[8], (hd, hd), jnp.float32)
        self.W_out_v = scale * jax.random.normal(keys[9], (hd, hd), jnp.float32)
        self.num_layers = L

    def __call__(self, ufea, vfea, UV_adj, VU_adj, adj):
        # TODO(synk): `adj` (joint user+item adjacency) is unused in the
        # reconstructed GNN; dropout is inference-disabled so it is omitted.
        del adj
        return evenodd_forward(
            ufea, vfea, UV_adj, VU_adj,
            self.W_u, self.W_v, self.Wp_u, self.Wp_v,
            self.att_u, self.att_v, self.W_out_u, self.W_out_v)


# --------------------------------------------------------------------------
# Main
# --------------------------------------------------------------------------

if __name__ == "__main__":
    opt = {
        "number_user": 16,
        "number_item": 24,
        "feature_dim": 32,
        "hidden_dim": 32,
        "num_layers": 2,
        "dropout": 0.0,
        "cuda": False,
    }

    key = jax.random.PRNGKey(0)
    k_model, k_u, k_v, k_uv = jax.random.split(key, 4)

    model = EvenOddMLPallas(opt, k_model)

    nu, ni, fd = opt["number_user"], opt["number_item"], opt["feature_dim"]
    ufea = jax.random.normal(k_u, (nu, fd), jnp.float32)
    vfea = jax.random.normal(k_v, (ni, fd), jnp.float32)

    # dense bipartite adjacency, row-normalized
    mask = (jax.random.uniform(k_uv, (nu, ni)) < 0.3).astype(jnp.float32)
    UV_adj = mask / jnp.maximum(mask.sum(axis=1, keepdims=True), 1.0)       # (nu, ni)
    VU_adj = mask.T / jnp.maximum(mask.T.sum(axis=1, keepdims=True), 1.0)   # (ni, nu)
    adj = jnp.zeros((nu + ni, nu + ni), jnp.float32)                        # unused

    outs = model(ufea, vfea, UV_adj, VU_adj, adj)
    for o in outs:
        jax.block_until_ready(o)

    print("KERNEL_OK")
</pallas_src>

<mosaic_0001>
module attributes {stable_mosaic.version = 11 : i64} {
  func.func @_fused_forward_kernel(%arg0: memref<16x32xf32, #tpu.memory_space<vmem>>, %arg1: memref<24x32xf32, #tpu.memory_space<vmem>>, %arg2: memref<16x24xf32, #tpu.memory_space<vmem>>, %arg3: memref<24x16xf32, #tpu.memory_space<vmem>>, %arg4: memref<32x32xf32, #tpu.memory_space<vmem>>, %arg5: memref<32x32xf32, #tpu.memory_space<vmem>>, %arg6: memref<2x32x32xf32, #tpu.memory_space<vmem>>, %arg7: memref<2x32x32xf32, #tpu.memory_space<vmem>>, %arg8: memref<1x32xf32, #tpu.memory_space<vmem>>, %arg9: memref<1x32xf32, #tpu.memory_space<vmem>>, %arg10: memref<32x32xf32, #tpu.memory_space<vmem>>, %arg11: memref<32x32xf32, #tpu.memory_space<vmem>>, %arg12: memref<16x32xf32, #tpu.memory_space<vmem>>, %arg13: memref<24x32xf32, #tpu.memory_space<vmem>>, %arg14: memref<16x32xf32, #tpu.memory_space<vmem>>, %arg15: memref<24x32xf32, #tpu.memory_space<vmem>>, %arg16: memref<16x3xf32, #tpu.memory_space<vmem>>, %arg17: memref<24x3xf32, #tpu.memory_space<vmem>>, %arg18: memref<3x16x32xf32, #tpu.memory_space<vmem>>, %arg19: memref<3x24x32xf32, #tpu.memory_space<vmem>>) attributes {dimension_semantics = [], scalar_prefetch = 0 : i64, scratch_operands = 0 : i64, tpu.core_type = #tpu.core_type<tc>} {
    %c0 = arith.constant 0 : index
    %c0_0 = arith.constant 0 : index
    %0 = vector.load %arg2[%c0, %c0_0] : memref<16x24xf32, #tpu.memory_space<vmem>>, vector<16x24xf32>
    %1 = arith.truncf %0 : vector<16x24xf32> to vector<16x24xbf16>
    %c0_1 = arith.constant 0 : index
    %c0_2 = arith.constant 0 : index
    %2 = vector.load %arg3[%c0_1, %c0_2] : memref<24x16xf32, #tpu.memory_space<vmem>>, vector<24x16xf32>
    %3 = arith.truncf %2 : vector<24x16xf32> to vector<24x16xbf16>
    %c0_3 = arith.constant 0 : index
    %c0_4 = arith.constant 0 : index
    %4 = vector.load %arg0[%c0_3, %c0_4] : memref<16x32xf32, #tpu.memory_space<vmem>>, vector<16x32xf32>
    %5 = arith.truncf %4 : vector<16x32xf32> to vector<16x32xbf16>
    %c0_5 = arith.constant 0 : index
    %c0_6 = arith.constant 0 : index
    %6 = vector.load %arg4[%c0_5, %c0_6] : memref<32x32xf32, #tpu.memory_space<vmem>>, vector<32x32xf32>
    %7 = arith.truncf %6 : vector<32x32xf32> to vector<32x32xbf16>
    %cst = arith.constant dense<0.000000e+00> : vector<16x32xf32>
    %8 = tpu.matmul %5, %7, %cst {dimension_numbers = #tpu.dot_dimension_numbers<[1], [0], [0], [1], [0, 0, 1, 1], [], []>} : vector<16x32xbf16>, vector<32x32xbf16>, vector<16x32xf32> -> vector<16x32xf32>
    %cst_7 = arith.constant 0.000000e+00 : f32
    %9 = vector.broadcast %cst_7 : f32 to vector<16x32xf32>
    %10 = arith.maximumf %8, %9 : vector<16x32xf32>
    %c0_8 = arith.constant 0 : index
    %c0_9 = arith.constant 0 : index
    %11 = vector.load %arg1[%c0_8, %c0_9] : memref<24x32xf32, #tpu.memory_space<vmem>>, vector<24x32xf32>
    %12 = arith.truncf %11 : vector<24x32xf32> to vector<24x32xbf16>
    %c0_10 = arith.constant 0 : index
    %c0_11 = arith.constant 0 : index
    %13 = vector.load %arg5[%c0_10, %c0_11] : memref<32x32xf32, #tpu.memory_space<vmem>>, vector<32x32xf32>
    %14 = arith.truncf %13 : vector<32x32xf32> to vector<32x32xbf16>
    %cst_12 = arith.constant dense<0.000000e+00> : vector<24x32xf32>
    %15 = tpu.matmul %12, %14, %cst_12 {dimension_numbers = #tpu.dot_dimension_numbers<[1], [0], [0], [1], [0, 0, 1, 1], [], []>} : vector<24x32xbf16>, vector<32x32xbf16>, vector<24x32xf32> -> vector<24x32xf32>
    %cst_13 = arith.constant 0.000000e+00 : f32
    %16 = vector.broadcast %cst_13 : f32 to vector<24x32xf32>
    %17 = arith.maximumf %15, %16 : vector<24x32xf32>
    %c0_14 = arith.constant 0 : index
    %c0_15 = arith.constant 0 : index
    %c0_16 = arith.constant 0 : index
    %18 = vector.load %arg18[%c0_14, %c0_15, %c0_16] : memref<3x16x32xf32, #tpu.memory_space<vmem>>, vector<1x16x32xf32>
    %19 = vector.shape_cast %18 : vector<1x16x32xf32> to vector<16x32xf32>
    %20 = vector.shape_cast %10 : vector<16x32xf32> to vector<1x16x32xf32>
    tpu.vector_store %arg18[%c0_14, %c0_15, %c0_16], %20 {strides = array<i32>} : memref<3x16x32xf32, #tpu.memory_space<vmem>>, vector<1x16x32xf32>,
    %c0_17 = arith.constant 0 : index
    %c0_18 = arith.constant 0 : index
    %c0_19 = arith.constant 0 : index
    %21 = vector.load %arg19[%c0_17, %c0_18, %c0_19] : memref<3x24x32xf32, #tpu.memory_space<vmem>>, vector<1x24x32xf32>
    %22 = vector.shape_cast %21 : vector<1x24x32xf32> to vector<24x32xf32>
    %23 = vector.shape_cast %17 : vector<24x32xf32> to vector<1x24x32xf32>
    tpu.vector_store %arg19[%c0_17, %c0_18, %c0_19], %23 {strides = array<i32>} : memref<3x24x32xf32, #tpu.memory_space<vmem>>, vector<1x24x32xf32>,
    %c0_20 = arith.constant 0 : index
    %c0_21 = arith.constant 0 : index
    %c0_22 = arith.constant 0 : index
    %24 = vector.load %arg6[%c0_20, %c0_21, %c0_22] : memref<2x32x32xf32, #tpu.memory_space<vmem>>, vector<1x32x32xf32>
    %25 = vector.shape_cast %24 : vector<1x32x32xf32> to vector<32x32xf32>
    %26 = arith.truncf %25 : vector<32x32xf32> to vector<32x32xbf16>
    %c0_23 = arith.constant 0 : index
    %c0_24 = arith.constant 0 : index
    %c0_25 = arith.constant 0 : index
    %27 = vector.load %arg7[%c0_23, %c0_24, %c0_25] : memref<2x32x32xf32, #tpu.memory_space<vmem>>, vector<1x32x32xf32>
    %28 = vector.shape_cast %27 : vector<1x32x32xf32> to vector<32x32xf32>
    %29 = arith.truncf %28 : vector<32x32xf32> to vector<32x32xbf16>
    %30 = arith.truncf %17 : vector<24x32xf32> to vector<24x32xbf16>
    %cst_26 = arith.constant dense<0.000000e+00> : vector<24x32xf32>
    %31 = tpu.matmul %30, %26, %cst_26 {dimension_numbers = #tpu.dot_dimension_numbers<[1], [0], [0], [1], [0, 0, 1, 1], [], []>} : vector<24x32xbf16>, vector<32x32xbf16>, vector<24x32xf32> -> vector<24x32xf32>
    %32 = arith.truncf %31 : vector<24x32xf32> to vector<24x32xbf16>
    %cst_27 = arith.constant dense<0.000000e+00> : vector<16x32xf32>
    %33 = tpu.matmul %1, %32, %cst_27 {dimension_numbers = #tpu.dot_dimension_numbers<[1], [0], [0], [1], [0, 0, 1, 1], [], []>} : vector<16x24xbf16>, vector<24x32xbf16>, vector<16x32xf32> -> vector<16x32xf32>
    %cst_28 = arith.constant 0.000000e+00 : f32
    %34 = vector.broadcast %cst_28 : f32 to vector<16x32xf32>
    %35 = arith.maximumf %33, %34 : vector<16x32xf32>
    %36 = arith.truncf %10 : vector<16x32xf32> to vector<16x32xbf16>
    %cst_29 = arith.constant dense<0.000000e+00> : vector<16x32xf32>
    %37 = tpu.matmul %36, %29, %cst_29 {dimension_numbers = #tpu.dot_dimension_numbers<[1], [0], [0], [1], [0, 0, 1, 1], [], []>} : vector<16x32xbf16>, vector<32x32xbf16>, vector<16x32xf32> -> vector<16x32xf32>
    %38 = arith.truncf %37 : vector<16x32xf32> to vector<16x32xbf16>
    %cst_30 = arith.constant dense<0.000000e+00> : vector<24x32xf32>
    %39 = tpu.matmul %3, %38, %cst_30 {dimension_numbers = #tpu.dot_dimension_numbers<[1], [0], [0], [1], [0, 0, 1, 1], [], []>} : vector<24x16xbf16>, vector<16x32xbf16>, vector<24x32xf32> -> vector<24x32xf32>
    %cst_31 = arith.constant 0.000000e+00 : f32
    %40 = vector.broadcast %cst_31 : f32 to vector<24x32xf32>
    %41 = arith.maximumf %39, %40 : vector<24x32xf32>
    %c1 = arith.constant 1 : index
    %c0_32 = arith.constant 0 : index
    %c0_33 = arith.constant 0 : index
    %42 = vector.load %arg18[%c1, %c0_32, %c0_33] : memref<3x16x32xf32, #tpu.memory_space<vmem>>, vector<1x16x32xf32>
    %43 = vector.shape_cast %42 : vector<1x16x32xf32> to vector<16x32xf32>
    %44 = vector.shape_cast %35 : vector<16x32xf32> to vector<1x16x32xf32>
    tpu.vector_store %arg18[%c1, %c0_32, %c0_33], %44 {strides = array<i32>} : memref<3x16x32xf32, #tpu.memory_space<vmem>>, vector<1x16x32xf32>,
    %c1_34 = arith.constant 1 : index
    %c0_35 = arith.constant 0 : index
    %c0_36 = arith.constant 0 : index
    %45 = vector.load %arg19[%c1_34, %c0_35, %c0_36] : memref<3x24x32xf32, #tpu.memory_space<vmem>>, vector<1x24x32xf32>
    %46 = vector.shape_cast %45 : vector<1x24x32xf32> to vector<24x32xf32>
    %47 = vector.shape_cast %41 : vector<24x32xf32> to vector<1x24x32xf32>
    tpu.vector_store %arg19[%c1_34, %c0_35, %c0_36], %47 {strides = array<i32>} : memref<3x24x32xf32, #tpu.memory_space<vmem>>, vector<1x24x32xf32>,
    %c1_37 = arith.constant 1 : index
    %c0_38 = arith.constant 0 : index
    %c0_39 = arith.constant 0 : index
    %48 = vector.load %arg6[%c1_37, %c0_38, %c0_39] : memref<2x32x32xf32, #tpu.memory_space<vmem>>, vector<1x32x32xf32>
    %49 = vector.shape_cast %48 : vector<1x32x32xf32> to vector<32x32xf32>
    %50 = arith.truncf %49 : vector<32x32xf32> to vector<32x32xbf16>
    %c1_40 = arith.constant 1 : index
    %c0_41 = arith.constant 0 : index
    %c0_42 = arith.constant 0 : index
    %51 = vector.load %arg7[%c1_40, %c0_41, %c0_42] : memref<2x32x32xf32, #tpu.memory_space<vmem>>, vector<1x32x32xf32>
    %52 = vector.shape_cast %51 : vector<1x32x32xf32> to vector<32x32xf32>
    %53 = arith.truncf %52 : vector<32x32xf32> to vector<32x32xbf16>
    %54 = arith.truncf %41 : vector<24x32xf32> to vector<24x32xbf16>
    %cst_43 = arith.constant dense<0.000000e+00> : vector<24x32xf32>
    %55 = tpu.matmul %54, %50, %cst_43 {dimension_numbers = #tpu.dot_dimension_numbers<[1], [0], [0], [1], [0, 0, 1, 1], [], []>} : vector<24x32xbf16>, vector<32x32xbf16>, vector<24x32xf32> -> vector<24x32xf32>
    %56 = arith.truncf %55 : vector<24x32xf32> to vector<24x32xbf16>
    %cst_44 = arith.constant dense<0.000000e+00> : vector<16x32xf32>
    %57 = tpu.matmul %1, %56, %cst_44 {dimension_numbers = #tpu.dot_dimension_numbers<[1], [0], [0], [1], [0, 0, 1, 1], [], []>} : vector<16x24xbf16>, vector<24x32xbf16>, vector<16x32xf32> -> vector<16x32xf32>
    %cst_45 = arith.constant 0.000000e+00 : f32
    %58 = vector.broadcast %cst_45 : f32 to vector<16x32xf32>
    %59 = arith.maximumf %57, %58 : vector<16x32xf32>
    %60 = arith.truncf %35 : vector<16x32xf32> to vector<16x32xbf16>
    %cst_46 = arith.constant dense<0.000000e+00> : vector<16x32xf32>
    %61 = tpu.matmul %60, %53, %cst_46 {dimension_numbers = #tpu.dot_dimension_numbers<[1], [0], [0], [1], [0, 0, 1, 1], [], []>} : vector<16x32xbf16>, vector<32x32xbf16>, vector<16x32xf32> -> vector<16x32xf32>
    %62 = arith.truncf %61 : vector<16x32xf32> to vector<16x32xbf16>
    %cst_47 = arith.constant dense<0.000000e+00> : vector<24x32xf32>
    %63 = tpu.matmul %3, %62, %cst_47 {dimension_numbers = #tpu.dot_dimension_numbers<[1], [0], [0], [1], [0, 0, 1, 1], [], []>} : vector<24x16xbf16>, vector<16x32xbf16>, vector<24x32xf32> -> vector<24x32xf32>
    %cst_48 = arith.constant 0.000000e+00 : f32
    %64 = vector.broadcast %cst_48 : f32 to vector<24x32xf32>
    %65 = arith.maximumf %63, %64 : vector<24x32xf32>
    %c2 = arith.constant 2 : index
    %c0_49 = arith.constant 0 : index
    %c0_50 = arith.constant 0 : index
    %66 = vector.load %arg18[%c2, %c0_49, %c0_50] : memref<3x16x32xf32, #tpu.memory_space<vmem>>, vector<1x16x32xf32>
    %67 = vector.shape_cast %66 : vector<1x16x32xf32> to vector<16x32xf32>
    %68 = vector.shape_cast %59 : vector<16x32xf32> to vector<1x16x32xf32>
    tpu.vector_store %arg18[%c2, %c0_49, %c0_50], %68 {strides = array<i32>} : memref<3x16x32xf32, #tpu.memory_space<vmem>>, vector<1x16x32xf32>,
    %c2_51 = arith.constant 2 : index
    %c0_52 = arith.constant 0 : index
    %c0_53 = arith.constant 0 : index
    %69 = vector.load %arg19[%c2_51, %c0_52, %c0_53] : memref<3x24x32xf32, #tpu.memory_space<vmem>>, vector<1x24x32xf32>
    %70 = vector.shape_cast %69 : vector<1x24x32xf32> to vector<24x32xf32>
    %71 = vector.shape_cast %65 : vector<24x32xf32> to vector<1x24x32xf32>
    tpu.vector_store %arg19[%c2_51, %c0_52, %c0_53], %71 {strides = array<i32>} : memref<3x24x32xf32, #tpu.memory_space<vmem>>, vector<1x24x32xf32>,
    %c0_54 = arith.constant 0 : index
    %c0_55 = arith.constant 0 : index
    %72 = vector.load %arg8[%c0_54, %c0_55] : memref<1x32xf32, #tpu.memory_space<vmem>>, vector<1x32xf32>
    %c0_56 = arith.constant 0 : index
    %c0_57 = arith.constant 0 : index
    %73 = vector.load %arg10[%c0_56, %c0_57] : memref<32x32xf32, #tpu.memory_space<vmem>>, vector<32x32xf32>
    %c0_58 = arith.constant 0 : index
    %c0_59 = arith.constant 0 : index
    %c0_60 = arith.constant 0 : index
    %74 = vector.load %arg18[%c0_58, %c0_59, %c0_60] : memref<3x16x32xf32, #tpu.memory_space<vmem>>, vector<1x16x32xf32>
    %75 = vector.shape_cast %74 : vector<1x16x32xf32> to vector<16x32xf32>
    %76 = vector.broadcast %72 : vector<1x32xf32> to vector<16x32xf32>
    %77 = arith.mulf %75, %76 : vector<16x32xf32>
    %cst_61 = arith.constant dense<0.000000e+00> : vector<16xf32>
    %78 = vector.multi_reduction <add>, %77, %cst_61 [1] : vector<16x32xf32> to vector<16xf32>
    %79 = vector.shape_cast %78 : vector<16xf32> to vector<16x1xf32>
    %c1_62 = arith.constant 1 : index
    %c0_63 = arith.constant 0 : index
    %c0_64 = arith.constant 0 : index
    %80 = vector.load %arg18[%c1_62, %c0_63, %c0_64] : memref<3x16x32xf32, #tpu.memory_space<vmem>>, vector<1x16x32xf32>
    %81 = vector.shape_cast %80 : vector<1x16x32xf32> to vector<16x32xf32>
    %82 = vector.broadcast %72 : vector<1x32xf32> to vector<16x32xf32>
    %83 = arith.mulf %81, %82 : vector<16x32xf32>
    %cst_65 = arith.constant dense<0.000000e+00> : vector<16xf32>
    %84 = vector.multi_reduction <add>, %83, %cst_65 [1] : vector<16x32xf32> to vector<16xf32>
    %85 = vector.shape_cast %84 : vector<16xf32> to vector<16x1xf32>
    %c2_66 = arith.constant 2 : index
    %c0_67 = arith.constant 0 : index
    %c0_68 = arith.constant 0 : index
    %86 = vector.load %arg18[%c2_66, %c0_67, %c0_68] : memref<3x16x32xf32, #tpu.memory_space<vmem>>, vector<1x16x32xf32>
    %87 = vector.shape_cast %86 : vector<1x16x32xf32> to vector<16x32xf32>
    %88 = vector.broadcast %72 : vector<1x32xf32> to vector<16x32xf32>
    %89 = arith.mulf %87, %88 : vector<16x32xf32>
    %cst_69 = arith.constant dense<0.000000e+00> : vector<16xf32>
    %90 = vector.multi_reduction <add>, %89, %cst_69 [1] : vector<16x32xf32> to vector<16xf32>
    %91 = vector.shape_cast %90 : vector<16xf32> to vector<16x1xf32>
    %92 = arith.maximumf %79, %85 : vector<16x1xf32>
    %93 = arith.maximumf %92, %91 : vector<16x1xf32>
    %94 = arith.subf %79, %93 : vector<16x1xf32>
    %95 = math.exp %94 : vector<16x1xf32>
    %c0_70 = arith.constant 0 : index
    %c0_71 = arith.constant 0 : index
    %c0_72 = arith.constant 0 : index
    %96 = vector.load %arg18[%c0_70, %c0_71, %c0_72] : memref<3x16x32xf32, #tpu.memory_space<vmem>>, vector<1x16x32xf32>
    %97 = vector.shape_cast %96 : vector<1x16x32xf32> to vector<16x32xf32>
    %98 = vector.broadcast %95 : vector<16x1xf32> to vector<16x32xf32>
    %99 = arith.mulf %98, %97 : vector<16x32xf32>
    %100 = arith.subf %85, %93 : vector<16x1xf32>
    %101 = math.exp %100 : vector<16x1xf32>
    %102 = arith.addf %95, %101 : vector<16x1xf32>
    %c1_73 = arith.constant 1 : index
    %c0_74 = arith.constant 0 : index
    %c0_75 = arith.constant 0 : index
    %103 = vector.load %arg18[%c1_73, %c0_74, %c0_75] : memref<3x16x32xf32, #tpu.memory_space<vmem>>, vector<1x16x32xf32>
    %104 = vector.shape_cast %103 : vector<1x16x32xf32> to vector<16x32xf32>
    %105 = vector.broadcast %101 : vector<16x1xf32> to vector<16x32xf32>
    %106 = arith.mulf %105, %104 : vector<16x32xf32>
    %107 = arith.addf %99, %106 : vector<16x32xf32>
    %108 = arith.subf %91, %93 : vector<16x1xf32>
    %109 = math.exp %108 : vector<16x1xf32>
    %110 = arith.addf %102, %109 : vector<16x1xf32>
    %c2_76 = arith.constant 2 : index
    %c0_77 = arith.constant 0 : index
    %c0_78 = arith.constant 0 : index
    %111 = vector.load %arg18[%c2_76, %c0_77, %c0_78] : memref<3x16x32xf32, #tpu.memory_space<vmem>>, vector<1x16x32xf32>
    %112 = vector.shape_cast %111 : vector<1x16x32xf32> to vector<16x32xf32>
    %113 = vector.broadcast %109 : vector<16x1xf32> to vector<16x32xf32>
    %114 = arith.mulf %113, %112 : vector<16x32xf32>
    %115 = arith.addf %107, %114 : vector<16x32xf32>
    %116 = tpu.reciprocal %110 {approx = true} : vector<16x1xf32> -> vector<16x1xf32>
    %117 = vector.broadcast %116 : vector<16x1xf32> to vector<16x32xf32>
    %118 = arith.mulf %115, %117 : vector<16x32xf32>
    %c0_79 = arith.constant 0 : index
    %c0_80 = arith.constant 0 : index
    %119 = vector.load %arg14[%c0_79, %c0_80] : memref<16x32xf32, #tpu.memory_space<vmem>>, vector<16x32xf32>
    tpu.vector_store %arg14[%c0_79, %c0_80], %118 {strides = array<i32>} : memref<16x32xf32, #tpu.memory_space<vmem>>, vector<16x32xf32>,
    %120 = tpu.concatenate %95, %101, %109 in 1 : vector<16x1xf32>, vector<16x1xf32>, vector<16x1xf32> -> vector<16x3xf32>
    %121 = vector.broadcast %116 : vector<16x1xf32> to vector<16x3xf32>
    %122 = arith.mulf %120, %121 : vector<16x3xf32>
    %c0_81 = arith.constant 0 : index
    %c0_82 = arith.constant 0 : index
    %123 = vector.load %arg16[%c0_81, %c0_82] : memref<16x3xf32, #tpu.memory_space<vmem>>, vector<16x3xf32>
    tpu.vector_store %arg16[%c0_81, %c0_82], %122 {strides = array<i32>} : memref<16x3xf32, #tpu.memory_space<vmem>>, vector<16x3xf32>,
    %124 = arith.truncf %118 : vector<16x32xf32> to vector<16x32xbf16>
    %125 = arith.truncf %73 : vector<32x32xf32> to vector<32x32xbf16>
    %cst_83 = arith.constant dense<0.000000e+00> : vector<16x32xf32>
    %126 = tpu.matmul %124, %125, %cst_83 {dimension_numbers = #tpu.dot_dimension_numbers<[1], [0], [0], [1], [0, 0, 1, 1], [], []>} : vector<16x32xbf16>, vector<32x32xbf16>, vector<16x32xf32> -> vector<16x32xf32>
    %127 = math.tanh %126 : vector<16x32xf32>
    %c0_84 = arith.constant 0 : index
    %c0_85 = arith.constant 0 : index
    %128 = vector.load %arg12[%c0_84, %c0_85] : memref<16x32xf32, #tpu.memory_space<vmem>>, vector<16x32xf32>
    tpu.vector_store %arg12[%c0_84, %c0_85], %127 {strides = array<i32>} : memref<16x32xf32, #tpu.memory_space<vmem>>, vector<16x32xf32>,
    %c0_86 = arith.constant 0 : index
    %c0_87 = arith.constant 0 : index
    %129 = vector.load %arg9[%c0_86, %c0_87] : memref<1x32xf32, #tpu.memory_space<vmem>>, vector<1x32xf32>
    %c0_88 = arith.constant 0 : index
    %c0_89 = arith.constant 0 : index
    %130 = vector.load %arg11[%c0_88, %c0_89] : memref<32x32xf32, #tpu.memory_space<vmem>>, vector<32x32xf32>
    %c0_90 = arith.constant 0 : index
    %c0_91 = arith.constant 0 : index
    %c0_92 = arith.constant 0 : index
    %131 = vector.load %arg19[%c0_90, %c0_91, %c0_92] : memref<3x24x32xf32, #tpu.memory_space<vmem>>, vector<1x24x32xf32>
    %132 = vector.shape_cast %131 : vector<1x24x32xf32> to vector<24x32xf32>
    %133 = vector.broadcast %129 : vector<1x32xf32> to vector<24x32xf32>
    %134 = arith.mulf %132, %133 : vector<24x32xf32>
    %cst_93 = arith.constant dense<0.000000e+00> : vector<24xf32>
    %135 = vector.multi_reduction <add>, %134, %cst_93 [1] : vector<24x32xf32> to vector<24xf32>
    %136 = vector.shape_cast %135 : vector<24xf32> to vector<24x1xf32>
    %c1_94 = arith.constant 1 : index
    %c0_95 = arith.constant 0 : index
    %c0_96 = arith.constant 0 : index
    %137 = vector.load %arg19[%c1_94, %c0_95, %c0_96] : memref<3x24x32xf32, #tpu.memory_space<vmem>>, vector<1x24x32xf32>
    %138 = vector.shape_cast %137 : vector<1x24x32xf32> to vector<24x32xf32>
    %139 = vector.broadcast %129 : vector<1x32xf32> to vector<24x32xf32>
    %140 = arith.mulf %138, %139 : vector<24x32xf32>
    %cst_97 = arith.constant dense<0.000000e+00> : vector<24xf32>
    %141 = vector.multi_reduction <add>, %140, %cst_97 [1] : vector<24x32xf32> to vector<24xf32>
    %142 = vector.shape_cast %141 : vector<24xf32> to vector<24x1xf32>
    %c2_98 = arith.constant 2 : index
    %c0_99 = arith.constant 0 : index
    %c0_100 = arith.constant 0 : index
    %143 = vector.load %arg19[%c2_98, %c0_99, %c0_100] : memref<3x24x32xf32, #tpu.memory_space<vmem>>, vector<1x24x32xf32>
    %144 = vector.shape_cast %143 : vector<1x24x32xf32> to vector<24x32xf32>
    %145 = vector.broadcast %129 : vector<1x32xf32> to vector<24x32xf32>
    %146 = arith.mulf %144, %145 : vector<24x32xf32>
    %cst_101 = arith.constant dense<0.000000e+00> : vector<24xf32>
    %147 = vector.multi_reduction <add>, %146, %cst_101 [1] : vector<24x32xf32> to vector<24xf32>
    %148 = vector.shape_cast %147 : vector<24xf32> to vector<24x1xf32>
    %149 = arith.maximumf %136, %142 : vector<24x1xf32>
    %150 = arith.maximumf %149, %148 : vector<24x1xf32>
    %151 = arith.subf %136, %150 : vector<24x1xf32>
    %152 = math.exp %151 : vector<24x1xf32>
    %c0_102 = arith.constant 0 : index
    %c0_103 = arith.constant 0 : index
    %c0_104 = arith.constant 0 : index
    %153 = vector.load %arg19[%c0_102, %c0_103, %c0_104] : memref<3x24x32xf32, #tpu.memory_space<vmem>>, vector<1x24x32xf32>
    %154 = vector.shape_cast %153 : vector<1x24x32xf32> to vector<24x32xf32>
    %155 = vector.broadcast %152 : vector<24x1xf32> to vector<24x32xf32>
    %156 = arith.mulf %155, %154 : vector<24x32xf32>
    %157 = arith.subf %142, %150 : vector<24x1xf32>
    %158 = math.exp %157 : vector<24x1xf32>
    %159 = arith.addf %152, %158 : vector<24x1xf32>
    %c1_105 = arith.constant 1 : index
    %c0_106 = arith.constant 0 : index
    %c0_107 = arith.constant 0 : index
    %160 = vector.load %arg19[%c1_105, %c0_106, %c0_107] : memref<3x24x32xf32, #tpu.memory_space<vmem>>, vector<1x24x32xf32>
    %161 = vector.shape_cast %160 : vector<1x24x32xf32> to vector<24x32xf32>
    %162 = vector.broadcast %158 : vector<24x1xf32> to vector<24x32xf32>
    %163 = arith.mulf %162, %161 : vector<24x32xf32>
    %164 = arith.addf %156, %163 : vector<24x32xf32>
    %165 = arith.subf %148, %150 : vector<24x1xf32>
    %166 = math.exp %165 : vector<24x1xf32>
    %167 = arith.addf %159, %166 : vector<24x1xf32>
    %c2_108 = arith.constant 2 : index
    %c0_109 = arith.constant 0 : index
    %c0_110 = arith.constant 0 : index
    %168 = vector.load %arg19[%c2_108, %c0_109, %c0_110] : memref<3x24x32xf32, #tpu.memory_space<vmem>>, vector<1x24x32xf32>
    %169 = vector.shape_cast %168 : vector<1x24x32xf32> to vector<24x32xf32>
    %170 = vector.broadcast %166 : vector<24x1xf32> to vector<24x32xf32>
    %171 = arith.mulf %170, %169 : vector<24x32xf32>
    %172 = arith.addf %164, %171 : vector<24x32xf32>
    %173 = tpu.reciprocal %167 {approx = true} : vector<24x1xf32> -> vector<24x1xf32>
    %174 = vector.broadcast %173 : vector<24x1xf32> to vector<24x32xf32>
    %175 = arith.mulf %172, %174 : vector<24x32xf32>
    %c0_111 = arith.constant 0 : index
    %c0_112 = arith.constant 0 : index
    %176 = vector.load %arg15[%c0_111, %c0_112] : memref<24x32xf32, #tpu.memory_space<vmem>>, vector<24x32xf32>
    tpu.vector_store %arg15[%c0_111, %c0_112], %175 {strides = array<i32>} : memref<24x32xf32, #tpu.memory_space<vmem>>, vector<24x32xf32>,
    %177 = tpu.concatenate %152, %158, %166 in 1 : vector<24x1xf32>, vector<24x1xf32>, vector<24x1xf32> -> vector<24x3xf32>
    %178 = vector.broadcast %173 : vector<24x1xf32> to vector<24x3xf32>
    %179 = arith.mulf %177, %178 : vector<24x3xf32>
    %c0_113 = arith.constant 0 : index
    %c0_114 = arith.constant 0 : index
    %180 = vector.load %arg17[%c0_113, %c0_114] : memref<24x3xf32, #tpu.memory_space<vmem>>, vector<24x3xf32>
    tpu.vector_store %arg17[%c0_113, %c0_114], %179 {strides = array<i32>} : memref<24x3xf32, #tpu.memory_space<vmem>>, vector<24x3xf32>,
    %181 = arith.truncf %175 : vector<24x32xf32> to vector<24x32xbf16>
    %182 = arith.truncf %130 : vector<32x32xf32> to vector<32x32xbf16>
    %cst_115 = arith.constant dense<0.000000e+00> : vector<24x32xf32>
    %183 = tpu.matmul %181, %182, %cst_115 {dimension_numbers = #tpu.dot_dimension_numbers<[1], [0], [0], [1], [0, 0, 1, 1], [], []>} : vector<24x32xbf16>, vector<32x32xbf16>, vector<24x32xf32> -> vector<24x32xf32>
    %184 = math.tanh %183 : vector<24x32xf32>
    %c0_116 = arith.constant 0 : index
    %c0_117 = arith.constant 0 : index
    %185 = vector.load %arg13[%c0_116, %c0_117] : memref<24x32xf32, #tpu.memory_space<vmem>>, vector<24x32xf32>
    tpu.vector_store %arg13[%c0_116, %c0_117], %184 {strides = array<i32>} : memref<24x32xf32, #tpu.memory_space<vmem>>, vector<24x32xf32>,
    return
  }
}

</mosaic_0001>

<bundles_post_ra>
// kernel: tpu_custom_call.1
= control target key start
LH: loop header
LB: loop body
LE: loop exit
PB: predicated region body
PF: predicated region fallthrough
CT: control target
= control target key end

     0   :  { %s2160_s0 = inlined_call_operand.hbm [shape: f32[16,32], index: 0, kind: input, shape index: {}]   ;;  %s2161_s1 = inlined_call_operand.hbm [shape: f32[24,32], index: 1, kind: input, shape index: {}]   ;;  %s2162_s2 = inlined_call_operand.hbm [shape: f32[16,24], index: 2, kind: input, shape index: {}]   ;;  %s2163_s3 = inlined_call_operand.vmem [shape: f32[24,16], index: 3, kind: input, shape index: {}]   ;;  %s2164_s4 = inlined_call_operand.vmem [shape: f32[32,32], index: 4, kind: input, shape index: {}]   ;;  %s2165_s5 = inlined_call_operand.hbm [shape: f32[32,32], index: 5, kind: input, shape index: {}]   ;;  %s2166_s6 = inlined_call_operand.hbm [shape: f32[2,32,32], index: 6, kind: input, shape index: {}]   ;;  %s2167_s7 = inlined_call_operand.hbm [shape: f32[2,32,32], index: 7, kind: input, shape index: {}]   ;;  %s2168_s8 = inlined_call_operand.vmem [shape: f32[1,32], index: 8, kind: input, shape index: {}]   ;;  %s2169_s9 = inlined_call_operand.vmem [shape: f32[1,32], index: 9, kind: input, shape index: {}]   ;;  %s2170_s10 = inlined_call_operand.hbm [shape: f32[32,32], index: 10, kind: input, shape index: {}]   ;;  %s2171_s11 = inlined_call_operand.hbm [shape: f32[32,32], index: 11, kind: input, shape index: {}]   ;;  %s2172_s12 = inlined_call_operand.hbm [shape: f32[16,32], index: 12, kind: output, shape index: {0}]   ;;  %s2173_s13 = inlined_call_operand.hbm [shape: f32[24,32], index: 13, kind: output, shape index: {1}]   ;;  %s2174_s14 = inlined_call_operand.hbm [shape: f32[16,32], index: 14, kind: output, shape index: {2}]   ;;  %s2175_s15 = inlined_call_operand.hbm [shape: f32[24,32], index: 15, kind: output, shape index: {3}]   ;;  %s2176_s16 = inlined_call_operand.vmem [shape: f32[16,3], index: 16, kind: output, shape index: {4}]   ;;  %s2177_s17 = inlined_call_operand.vmem [shape: f32[24,3], index: 17, kind: output, shape index: {5}]   ;;  %s2178_s18 = inlined_call_operand.hbm [shape: f32[3,16,32], index: 18, kind: output, shape index: {6}]   ;;  %s2179_s19 = inlined_call_operand.hbm [shape: f32[3,24,32], index: 19, kind: output, shape index: {7}]  }
   0x1   :  { %2181 = sst [smem:[#allocation34_spill]] %s2160_s0 }
   0x2   :  { %2182 = sst [smem:[#allocation35_spill]] %s2161_s1 }
   0x3   :  { %2183 = sst [smem:[#allocation36_spill]] %s2162_s2 }
   0x4   :  { %2184 = sst [smem:[#allocation37_spill]] %s2163_s3 }
   0x5   :  { %25 = vsyncpa [#allocation3], 0 }
   0x6   :  { %26 = vsyncpa [#allocation6], 0 }
   0x7   :  { %27 = vsyncpa [#allocation9], 0 }
   0x8   :  { %28 = vsyncpa [#allocation12], 0 }
   0x9   :  { %29 = vsyncpa [#allocation15], 0 }
   0xa   :  { %30 = vsyncpa [#allocation4], 0 }
   0xb   :  { %31 = vsyncpa [#allocation18], 0 }
   0xc   :  { %32 = vsyncpa [#allocation21], 0 }
   0xd   :  { %33 = vsyncpa [#allocation24], 0  ;;  %s1719_s0 = smov [#allocation5]   ;;  %s1720_s20 = smov [#allocation8]  }
   0xe   :  { %s51_s30 = sshll.u32 %s1719_s0, 4  ;;  %s79_s21 = sshll.u32 %s1720_s20, 4  ;;  %s52_s30 = int_to_ptr.vmem [resolvable:$true] %s51_s30  ;;  %s80_s21 = int_to_ptr.vmem [resolvable:$true] %s79_s21 }
   0xf   :  { %s1429_s1 = scalar_lea.vmem %s52_s30, 384  ;;  %p1434_p1 = scmp.lt.s32.totalorder %s52_s30, %s52_s30 }
  0x10   :  { %p1430_p0 = scmp.ne.s32.totalorder %s52_s30, %s1429_s1  ;;  %p1435_p2 = scmp.lt.s32.totalorder %s1429_s1, %s1429_s1 }
  0x12   :  { %p1436_p3 = por %p1435_p2, %p1434_p1 }
  0x14   :  { %p1437_p4 = pnand %p1436_p3, %p1430_p0 }
  0x16   :  { %1440 = shalt.err (!%p1437_p4)
}
  0x17   :  { %s1721_s22 = smov 128   ;;  %s1722_s2 = smov 8  }
  0x18   :  { %s2185_s25 = sld [smem:[#allocation35_spill]]  ;;  %s1449_s3 = scalar_lea.vmem %s80_s21, 512 }
  0x19   :  { %p1450_p5 = scmp.ne.s32.totalorder %s80_s21, %s1449_s3  ;;  %p1454_p6 = scmp.lt.s32.totalorder %s80_s21, %s80_s21 }
  0x1a   :  { %p1455_p7 = scmp.lt.s32.totalorder %s1449_s3, %s1449_s3 }
  0x1c   :  { %p1456_p8 = por %p1455_p7, %p1454_p6 }
  0x1e   :  { %57 = dma.hbm_to_vmem [thread:$0]  %s2185_s25, 384, %s52_s30, [#allocation6], %s1721_s22, %s1721_s22, %s1722_s2  }
  0x1f   :  { %p1457_p9 = pnand %p1456_p8, %p1450_p5 }
  0x21   :  { %1460 = shalt.err (!%p1457_p9)
}
  0x22   :  { %85 = dma.hbm_to_vmem [thread:$0]  %s2165_s5, 512, %s80_s21, [#allocation9], %s1721_s22, %s1721_s22, %s1722_s2  }
  0x23   :  { %s1723_s28 = smov [#allocation11]   ;;  %s1724_s0 = smov [#allocation2]  }
  0x24   :  { %s103_s29 = sshll.u32 %s1723_s28, 4  ;;  %s39_s20 = sshll.u32 %s1724_s0, 4  ;;  %s104_s29 = int_to_ptr.vmem [resolvable:$true] %s103_s29  ;;  %s40_s20 = int_to_ptr.vmem [resolvable:$true] %s39_s20 }
  0x25   :  { %s1469_s30 = scalar_lea.vmem %s104_s29, 1024  ;;  %p1474_p11 = scmp.lt.s32.totalorder %s104_s29, %s104_s29 }
  0x26   :  { %p1470_p10 = scmp.ne.s32.totalorder %s104_s29, %s1469_s30  ;;  %p1475_p12 = scmp.lt.s32.totalorder %s1469_s30, %s1469_s30 }
  0x28   :  { %p1476_p13 = por %p1475_p12, %p1474_p11 }
  0x2a   :  { %p1477_p0 = pnand %p1476_p13, %p1470_p10 }
  0x2c   :  { %1480 = shalt.err (!%p1477_p0)
}
  0x2d   :  { %109 = dma.hbm_to_vmem [thread:$0]  %s2167_s7, 1024, %s104_s29, [#allocation12], %s1721_s22, %s1721_s22, %s1722_s2  }
  0x2e   :  { %s1489_s5 = scalar_lea.vmem %s40_s20, 256  ;;  %p1494_p2 = scmp.lt.s32.totalorder %s40_s20, %s40_s20 }
  0x2f   :  { %p1490_p1 = scmp.ne.s32.totalorder %s40_s20, %s1489_s5  ;;  %p1495_p3 = scmp.lt.s32.totalorder %s1489_s5, %s1489_s5 }
  0x31   :  { %p1496_p4 = por %p1495_p3, %p1494_p2 }
  0x33   :  { %p1497_p5 = pnand %p1496_p4, %p1490_p1 }
  0x35   :  { %1500 = shalt.err (!%p1497_p5)
}
  0x36   :  { %s2186_s25 = sld [smem:[#allocation34_spill]]  ;;  %s1725_s3 = smov [#allocation7]  }
  0x37   :  { %s63_s26 = sshll.u32 %s1725_s3, 4  ;;  %s1726_s27 = smov [#allocation10]   ;;  %s64_s26 = int_to_ptr.vmem [resolvable:$true] %s63_s26 }
  0x38   :  { %s91_s28 = sshll.u32 %s1726_s27, 4  ;;  %s1509_s7 = scalar_lea.vmem %s64_s26, 256  ;;  %s92_s28 = int_to_ptr.vmem [resolvable:$true] %s91_s28 }
  0x39   :  { %p1510_p6 = scmp.ne.s32.totalorder %s64_s26, %s1509_s7  ;;  %p1514_p7 = scmp.lt.s32.totalorder %s64_s26, %s64_s26 }
  0x3a   :  { %p1515_p8 = scmp.lt.s32.totalorder %s1509_s7, %s1509_s7 }
  0x3c   :  { %45 = dma.hbm_to_vmem [thread:$0]  %s2186_s25, 256, %s40_s20, [#allocation3], %s1721_s22, %s1721_s22, %s1722_s2  }
  0x3d   :  { %p1516_p9 = por %p1515_p8, %p1514_p7 }
  0x3f   :  { %p1517_p10 = pnand %p1516_p9, %p1510_p6 }
  0x41   :  { %1520 = shalt.err (!%p1517_p10)
}
  0x42   :  { %s2187_s30 = sld [smem:[#allocation36_spill]]  ;;  %s1529_s20 = scalar_lea.vmem %s92_s28, 1024 }
  0x43   :  { %p1530_p11 = scmp.ne.s32.totalorder %s92_s28, %s1529_s20  ;;  %p1534_p12 = scmp.lt.s32.totalorder %s92_s28, %s92_s28 }
  0x44   :  { %p1535_p13 = scmp.lt.s32.totalorder %s1529_s20, %s1529_s20 }
  0x46   :  { %p1536_p0 = por %p1535_p13, %p1534_p12 }
  0x48   :  { %69 = dma.hbm_to_vmem [thread:$0]  %s2187_s30, 256, %s64_s26, [#allocation6], %s1721_s22, %s1721_s22, %s1722_s2  }
  0x49   :  { %p1537_p1 = pnand %p1536_p0, %p1530_p11 }
  0x4b   :  { %1540 = shalt.err (!%p1537_p1)
}
  0x4c   :  { %97 = dma.hbm_to_vmem [thread:$0]  %s2166_s6, 1024, %s92_s28, [#allocation9], %s1721_s22, %s1721_s22, %s1722_s2  }
  0x4d   :  { %s1727_s5 = smov [#allocation13]   ;;  %s1728_s24 = smov [#allocation14]  }
  0x4e   :  { %s119_s21 = sshll.u32 %s1727_s5, 4  ;;  %s131_s25 = sshll.u32 %s1728_s24, 4  ;;  %s120_s21 = int_to_ptr.vmem [resolvable:$true] %s119_s21  ;;  %s132_s25 = int_to_ptr.vmem [resolvable:$true] %s131_s25 }
  0x4f   :  { %s1549_s3 = scalar_lea.vmem %s120_s21, 512  ;;  %p1554_p3 = scmp.lt.s32.totalorder %s120_s21, %s120_s21 }
  0x50   :  { %p1550_p2 = scmp.ne.s32.totalorder %s120_s21, %s1549_s3  ;;  %p1555_p4 = scmp.lt.s32.totalorder %s1549_s3, %s1549_s3 }
  0x52   :  { %p1556_p5 = por %p1555_p4, %p1554_p3 }
  0x54   :  { %p1557_p6 = pnand %p1556_p5, %p1550_p2 }
  0x56   :  { %1560 = shalt.err (!%p1557_p6)
}
  0x57   :  { %125 = dma.hbm_to_vmem [thread:$0]  %s2170_s10, 512, %s120_s21, [#allocation12], %s1721_s22, %s1721_s22, %s1722_s2  }
  0x58   :  { %s1569_s6 = scalar_lea.vmem %s132_s25, 512  ;;  %p1574_p8 = scmp.lt.s32.totalorder %s132_s25, %s132_s25 }
  0x59   :  { %p1570_p7 = scmp.ne.s32.totalorder %s132_s25, %s1569_s6  ;;  %p1575_p9 = scmp.lt.s32.totalorder %s1569_s6, %s1569_s6 }
  0x5b   :  { %p1576_p10 = por %p1575_p9, %p1574_p8 }
  0x5d   :  { %p1577_p11 = pnand %p1576_p10, %p1570_p7 }
  0x5f   :  { %1580 = shalt.err (!%p1577_p11)
}
  0x60   :  { %137 = dma.hbm_to_vmem [thread:$0]  %s2171_s11, 512, %s132_s25, [#allocation15], %s1721_s22, %s1721_s22, %s1722_s2  }
  0x61   :  { %1701 = dma.done.wait [#allocation3], 256  }
  0x62   :  { %1702 = vsyncadd [#allocation3], 4294967040 }
  0x63   :  { %1703 = dma.done.wait [#allocation6], 640  }
  0x64   :  { %1704 = vsyncadd [#allocation6], 4294966656 }
  0x65   :  { %1705 = dma.done.wait [#allocation9], 1536  }
  0x66   :  { %1706 = vsyncadd [#allocation9], 4294965760 }
  0x67   :  { %1707 = dma.done.wait [#allocation12], 1536  }
  0x68   :  { %1708 = vsyncadd [#allocation12], 4294965760 }
  0x69   :  { %1709 = dma.done.wait [#allocation15], 512  }
  0x6a   :  { %1710 = vsyncadd [#allocation15], 4294966784  ;;  %v1729_v0 = vmov 0.0   ;;  %vm1730_vm0 = vmmov 0   ;;  %v234_v1 = vld [vmem:[#allocation8 + $0x10] sm:$0xff]  ;;  %v235_v2 = vld [vmem:[#allocation8 + $0x18] sm:$0xff] }
  0x6b   :  { %1261 = vmatprep.subr.bf16.mxu0 %v1729_v0  ;;  %1265 = vmatprep.mubr.msk.bf16.mxu0 %vm1730_vm0, %v1729_v0  ;;  %v232_v3 = vld [vmem:[#allocation8] sm:$0xff]  ;;  %v237_v4 = vpack.c.bf16 %v235_v2, %v234_v1  ;;  %v233_v5 = vld [vmem:[#allocation8 + $0x8] sm:$0xff]  ;;  %v176_v6 = vld [vmem:[%s2164_s4 + $0x10] sm:$0xff]  ;;  %vm180_vm1 = vcmask 261120   ;;  %vm374_vm2 = vcmask 1043456   ;;  %s2188_s25 = sld [smem:[#allocation37_spill]] }
  0x6c   :  { %v177_v7 = vld [vmem:[%s2164_s4 + $0x18] sm:$0xff]  ;;  %v236_v8 = vpack.c.bf16 %v233_v5, %v232_v3  ;;  %v227_v10 = vld [vmem:[#allocation5] sm:$0xff]  ;;  %v174_v13 = vld [vmem:[%s2164_s4] sm:$0xff]  ;;  %vm370_vm3 = vcmask 195584   ;;  %vm467_vm4 = vcmask 130048   ;;  %vm837_vm5 = vcmask 7168  }
  0x6d   :  { %v179_v9 = vpack.c.bf16 %v177_v7, %v176_v6  ;;  %v228_v11 = vld [vmem:[#allocation5 + $0x8] sm:$0xff]  ;;  %1269 = vmatprep.subr.bf16.mxu1 %v237_v4  ;;  %v175_v14 = vld [vmem:[%s2164_s4 + $0x8] sm:$0xff]  ;;  %v229_v15 = vld [vmem:[#allocation5 + $0x10] sm:$0xff]  ;;  %vm840_vm6 = vcmask 15360   ;;  %vm845_vm7 = vcmask 23552   ;;  %s1731_s23 = smov [#allocation20]  }
  0x6e   :  { %v230_v12 = vpack.c.bf16 %v228_v11, %v227_v10  ;;  %1270 = vmatpush3.bf16.msra.mxu1 %v237_v4  ;;  %v178_v16 = vpack.c.bf16 %v175_v14, %v174_v13  ;;  %v171_v17 = vld [vmem:[#allocation2] sm:$0xff]  ;;  %v172_v18 = vld [vmem:[#allocation2 + $0x8] sm:$0xff]  ;;  %v231_v19 = vpack.c.bf16 %v229_v15, %v229_v15  ;;  %v303_v22 = vld [vmem:[#allocation10 + $0x18] sm:$0xff]  ;;  %s1135_s4 = sshll.u32 %s1731_s23, 4  ;;  %s1136_s4 = int_to_ptr.vmem [resolvable:$true] %s1135_s4 }
  0x6f   :  { %1262 = vmatpush3.bf16.msra.mxu0 %v179_v9  ;;  %1271 = vmatprep.subr.bf16.mxu1 %v236_v8  ;;  %v173_v20 = vpack.c.bf16 %v172_v18, %v171_v17  ;;  %v302_v21 = vld [vmem:[#allocation10 + $0x10] sm:$0xff]  ;;  %v300_v24 = vld [vmem:[#allocation10] sm:$0xff]  ;;  %v301_v25 = vld [vmem:[#allocation10 + $0x8] sm:$0xff]  ;;  %s1581_s5 = scalar_lea.vmem %s1136_s4, 384  ;;  %p1586_p13 = scmp.lt.s32.totalorder %s1136_s4, %s1136_s4 }
  0x70   :  { %1273 = vmatprep.mubr.msk.bf16.mxu1 %vm180_vm1, %v230_v12  ;;  %1263 = vmatprep.subr.bf16.mxu0 %v1729_v0  ;;  %v305_v23 = vpack.c.bf16 %v303_v22, %v302_v21  ;;  %v304_v26 = vpack.c.bf16 %v301_v25, %v300_v24  ;;  %v308_v39 = vld [vmem:[#allocation11 + $0x10] sm:$0xff]  ;;  %v309_v40 = vld [vmem:[#allocation11 + $0x18] sm:$0xff]  ;;  %v1915_v42 = vld [vmem:[%s2169_s9] ss:$0 sm:$0xff]  ;;  %p1582_p12 = scmp.ne.s32.totalorder %s1136_s4, %s1581_s5  ;;  %p1587_p0 = scmp.lt.s32.totalorder %s1581_s5, %s1581_s5 }
  0x71   :  { %v311_v44 = vpack.c.bf16 %v309_v40, %v308_v39  ;;  %v306_v45 = vld [vmem:[#allocation11] sm:$0xff]  ;;  %v307_v46 = vld [vmem:[#allocation11 + $0x8] sm:$0xff]  ;;  %v164_v9 = vld [vmem:[#allocation7 + $0x8] sm:$0xff] }
  0x72   :  { %1272 = vmatpush3.bf16.msra.mxu1 %v236_v8  ;;  %v1923_v49 = vld [vmem:[%s2168_s8] ss:$0 sm:$0xff]  ;;  %v310_v55 = vpack.c.bf16 %v307_v46, %v306_v45  ;;  %v163_v8 = vld [vmem:[#allocation7] sm:$0xff]  ;;  %v536_v24 = vld [vmem:[#allocation10 + $0x38] sm:$0xff]  ;;  %p1588_p1 = por %p1587_p0, %p1586_p13 }
  0x73   :  { %1264 = vmatpush3.bf16.msra.mxu0 %v178_v16  ;;  %1285 = vmatprep.subr.bf16.mxu1 %v1729_v0  ;;  %v166_v11 = vld [vmem:[%s2188_s25] sm:$0xff]  ;;  %v167_v12 = vld [vmem:[%s2188_s25 + $0x8] sm:$0xff]  ;;  %v1962_v15 = vpack.c.bf16 %v164_v9, %v163_v8 }
  0x74   :  { %1277 = vmatprep.subr.bf16.mxu0 %v305_v23  ;;  %v1964_v16 = vpack.c.bf16 %v167_v12, %v166_v11  ;;  %v542_v46 = vld [vmem:[#allocation11 + $0x30] sm:$0xff]  ;;  %p1589_p2 = pnand %p1588_p1, %p1582_p12 }
  0x75   :  { %1274 = vmatmul.mubr.msk.bf16.vlgmr.msra.gmra.mxu1 %vm180_vm1, %v231_v19 }
  0x76   :  { %1266 = vmatmul.mubr.msk.bf16.vlgmr.msra.gmra.mxu0 %vm180_vm1, %v173_v20  ;;  %1289 = vmatprep.mubr.msk.bf16.mxu1 %vm1730_vm0, %v1729_v0  ;;  %v168_v20 = vld [vmem:[%s2188_s25 + $0x10] sm:$0xff] }
  0x77   :  { %1278 = vmatpush3.bf16.msra.mxu0 %v305_v23  ;;  %v1973_v22 = vpack.c.bf16 %v168_v20, %v168_v20  ;;  %v535_v23 = vld [vmem:[#allocation10 + $0x30] sm:$0xff] }
  0x78   :  { %1279 = vmatprep.subr.bf16.mxu0 %v304_v26  ;;  %v538_v25 = vpack.c.bf16 %v536_v24, %v535_v23 }
  0x7b   :  { %1280 = vmatpush3.bf16.msra.mxu0 %v304_v26  ;;  %v533_v26 = vld [vmem:[#allocation10 + $0x20] sm:$0xff] }
  0x7c   :  { %1293 = vmatprep.subr.bf16.mxu0 %v1729_v0 }
 0x135   :  { %v1275_v27 = vpop.f32.mrf.mxu1 }
 0x136   :  { %v218_v28 = vpop.f32.mrf.mxu0  ;;  %v294_v29 = vmax.f32 %v1275_v27, 0.0  ;;  %v534_v27 = vld [vmem:[#allocation10 + $0x28] sm:$0xff] }
 0x137   :  { %v225_v30 = vmax.f32 %v218_v28, 0.0  ;;  %v278_v31 = vpop.f32.mrf.mxu1  ;;  %v537_v28 = vpack.c.bf16 %v534_v27, %v533_v26 }
 0x138   :  { %v1267_v32 = vpop.f32.mrf.mxu0  ;;  %299 = vst.msk [vmem:[#allocation23 + $0x10] sm:$0xff] %vm180_vm1, %v294_v29  ;;  %v292_v33 = vmax.f32 %v278_v31, 0.0  ;;  %v313_v47 = vpack.c.bf16 %v294_v29, %v294_v29 }
 0x139   :  { %295 = vst.msk [vmem:[#allocation22] sm:$0xff] %vm180_vm1, %v225_v30  ;;  %v1276_v34 = vpop.f32.mrf.mxu1 }
 0x13a   :  { %v221_v35 = vpop.f32.mrf.mxu0  ;;  %297 = vst.msk [vmem:[#allocation23] sm:$0xff] %vm180_vm1, %v292_v33 }
 0x13b   :  { %v226_v36 = vmax.f32 %v221_v35, 0.0  ;;  %v281_v37 = vpop.f32.mrf.mxu1 }
 0x13c   :  { %v1268_v38 = vpop.f32.mrf.mxu0  ;;  %v293_v41 = vmax.f32 %v281_v37, 0.0 }
 0x13d   :  { %296 = vst.msk [vmem:[#allocation22 + $0x8] sm:$0xff] %vm180_vm1, %v226_v36  ;;  %v421_v61 = vpack.c.bf16 %v226_v36, %v225_v30 }
 0x13e   :  { %298 = vst.msk [vmem:[#allocation23 + $0x8] sm:$0xff] %vm180_vm1, %v293_v41  ;;  %v312_v43 = vpack.c.bf16 %v293_v41, %v292_v33 }
 0x13f   :  { %v1918_v48 = vld [vmem:[#allocation23 + $0x10] sm:$0xff] }
 0x140   :  { %v1925_v50 = vld [vmem:[#allocation22] sm:$0xff]  ;;  %1281 = vmatprep.mubr.msk.bf16.mxu0 %vm180_vm1, %v312_v43  ;;  %v915_v51 = vmul.f32 %v1915_v42, %v1918_v48 }
 0x141   :  { %v767_v52 = vmul.f32 %v1923_v49, %v1925_v50  ;;  %1282 = vmatmul.mubr.msk.bf16.vlgmr.msra.gmra.mxu0 %vm180_vm1, %v313_v47  ;;  %v1933_v53 = vld [vmem:[#allocation23] sm:$0xff]  ;;  %v543_v47 = vld [vmem:[#allocation11 + $0x38] sm:$0xff] }
 0x142   :  { %1294 = vmatpush3.bf16.msra.mxu0 %v311_v44  ;;  %v922_v54 = vsel %vm180_vm1, %v915_v51, 0.0  ;;  %v913_v56 = vmul.f32 %v1915_v42, %v1933_v53  ;;  %1297 = vmatprep.mubr.msk.bf16.mxu0 %vm1730_vm0, %v1729_v0 }
 0x143   :  { %v769_v57 = vsel %vm180_vm1, %v767_v52, 0.0  ;;  %923 = vadd.xlane.f32.xlu0 %v922_v54  ;;  %1295 = vmatprep.subr.bf16.mxu0 %v1729_v0 }
 0x144   :  { %v1942_v58 = vld [vmem:[#allocation22 + $0x8] sm:$0xff]  ;;  %770 = vadd.xlane.f32.xlu1 %v769_v57  ;;  %v916_v60 = vsel %vm180_vm1, %v913_v56, 0.0  ;;  %v545_v56 = vpack.c.bf16 %v543_v47, %v542_v46 }
 0x145   :  { %v768_v59 = vmul.f32 %v1923_v49, %v1942_v58  ;;  %v1947_v62 = vld [vmem:[#allocation23 + $0x8] sm:$0xff] }
 0x146   :  { %1296 = vmatpush3.bf16.msra.mxu0 %v310_v55  ;;  %v914_v1 = vmul.f32 %v1915_v42, %v1947_v62 }
 0x147   :  { %917 = vadd.xlane.f32.xlu0 %v916_v60  ;;  %v772_v63 = vsel %vm180_vm1, %v768_v59, 0.0  ;;  %1307 = vmatprep.subr.bf16.mxu0 %v538_v25  ;;  %v540_v60 = vld [vmem:[#allocation11 + $0x20] sm:$0xff] }
 0x148   :  { %v919_v2 = vsel %vm180_vm1, %v914_v1, 0.0 }
 0x149   :  { %1298 = vmatmul.mubr.msk.bf16.vlgmr.msra.gmra.mxu0 %vm180_vm1, %v421_v61  ;;  %v541_v61 = vld [vmem:[#allocation11 + $0x28] sm:$0xff] }
 0x14a   :  { %1308 = vmatpush3.bf16.msra.mxu0 %v538_v25 }
 0x14b   :  { %773 = vadd.xlane.f32.xlu0 %v772_v63  ;;  %1309 = vmatprep.subr.bf16.mxu0 %v537_v28 }
 0x14e   :  { %1310 = vmatpush3.bf16.msra.mxu0 %v537_v28 }
 0x14f   :  { %920 = vadd.xlane.f32.xlu0 %v919_v2  ;;  %1323 = vmatprep.subr.bf16.mxu0 %v1729_v0 }
 0x201   :  { %v1283_v3 = vpop.f32.mrf.mxu0 }
 0x202   :  { %v369_v4 = vpack.c.bf16 %v1283_v3, %v1283_v3  ;;  %v544_v3 = vpack.c.bf16 %v541_v61, %v540_v60  ;;  %v903_v60 = vld [vmem:[#allocation14 + $0x18] sm:$0xff]  ;;  %v757_v61 = vld [vmem:[#allocation13 + $0x10] sm:$0xff] }
 0x203   :  { %v354_v5 = vpop.f32.mrf.mxu0 }
 0x204   :  { %v376_v6 = vsel %vm374_vm2, %v369_v4, 0 }
 0x205   :  { %v1284_v7 = vpop.f32.mrf.mxu0  ;;  %1286 = vmatpush3.bf16.msra.mxu1 %v376_v6 }
 0x206   :  { %1287 = vmatprep.subr.bf16.mxu1 %v1729_v0 }
 0x207   :  { %v357_v10 = vpop.f32.mrf.mxu0 }
 0x208   :  { %v368_v13 = vpack.c.bf16 %v357_v10, %v354_v5 }
 0x209   :  { %v459_v14 = vpop.f32.mrf.mxu0 }
 0x20a   :  { %1288 = vmatpush3.bf16.msra.mxu1 %v368_v13 }
 0x20b   :  { %v1299_v17 = vpop.f32.mrf.mxu0 }
 0x20d   :  { %1290 = vmatmul.mubr.msk.bf16.vlgmr.msra.gmra.mxu1 %vm370_vm3, %v1962_v15  ;;  %v462_v18 = vpop.f32.mrf.mxu0 }
 0x20e   :  { %v466_v19 = vpack.c.bf16 %v462_v18, %v459_v14  ;;  %1303 = vmatprep.mubr.msk.bf16.mxu1 %vm467_vm4, %v1964_v16 }
 0x20f   :  { %v1300_v21 = vpop.f32.mrf.mxu0 }
 0x210   :  { %1301 = vmatprep.subr.bf16.mxu1 %v466_v19 }
 0x211   :  { %1302 = vmatpush3.bf16.msra.mxu1 %v466_v19 }
 0x212   :  { %1315 = vmatprep.subr.bf16.mxu1 %v1729_v0 }
 0x215   :  { %1304 = vmatmul.mubr.msk.bf16.vlgmr.msra.gmra.mxu1 %vm467_vm4, %v1973_v22 }
 0x216   :  { %1319 = vmatprep.mubr.msk.bf16.mxu1 %vm1730_vm0, %v1729_v0 }
 0x2cd   :  { %v412_v29 = vpop.f32.mrf.mxu1 }
 0x2ce   :  { %v419_v30 = vmax.f32 %v412_v29, 0.0 }
 0x2cf   :  { %v1291_v31 = vpop.f32.mrf.mxu1 }
 0x2d0   :  { %526 = vst.msk [vmem:[#allocation22 + $0x10] sm:$0xff] %vm180_vm1, %v419_v30 }
 0x2d1   :  { %v415_v32 = vpop.f32.mrf.mxu1 }
 0x2d2   :  { %v420_v33 = vmax.f32 %v415_v32, 0.0 }
 0x2d3   :  { %v1292_v34 = vpop.f32.mrf.mxu1 }
 0x2d4   :  { %527 = vst.msk [vmem:[#allocation22 + $0x18] sm:$0xff] %vm180_vm1, %v420_v33  ;;  %v650_v8 = vpack.c.bf16 %v420_v33, %v419_v30 }
 0x2d5   :  { %v1305_v35 = vpop.f32.mrf.mxu1 }
 0x2d6   :  { %v524_v36 = vmax.f32 %v1305_v35, 0.0 }
 0x2d7   :  { %v508_v37 = vpop.f32.mrf.mxu1  ;;  %v1983_v38 = vld [vmem:[#allocation22 + $0x10] sm:$0xff] }
 0x2d8   :  { %531 = vst.msk [vmem:[#allocation23 + $0x28] sm:$0xff] %vm180_vm1, %v524_v36  ;;  %v522_v39 = vmax.f32 %v508_v37, 0.0  ;;  %v777_v40 = vmul.f32 %v1923_v49, %v1983_v38  ;;  %v547_v57 = vpack.c.bf16 %v524_v36, %v524_v36 }
 0x2d9   :  { %v1306_v41 = vpop.f32.mrf.mxu1 }
 0x2da   :  { %529 = vst.msk [vmem:[#allocation23 + $0x18] sm:$0xff] %vm180_vm1, %v522_v39  ;;  %v779_v43 = vsel %vm180_vm1, %v777_v40, 0.0 }
 0x2db   :  { %780 = vadd.xlane.f32.xlu1 %v779_v43  ;;  %v511_v44 = vpop.f32.mrf.mxu1  ;;  %v1990_v45 = vld [vmem:[#allocation22 + $0x18] sm:$0xff] }
 0x2dc   :  { %v523_v51 = vmax.f32 %v511_v44, 0.0  ;;  %v778_v52 = vmul.f32 %v1923_v49, %v1990_v45 }
 0x2de   :  { %530 = vst.msk [vmem:[#allocation23 + $0x20] sm:$0xff] %vm180_vm1, %v523_v51  ;;  %v546_v54 = vpack.c.bf16 %v523_v51, %v522_v39  ;;  %v782_v55 = vsel %vm180_vm1, %v778_v52, 0.0 }
 0x2df   :  { %783 = vadd.xlane.f32.xlu0 %v782_v55  ;;  %v1996_v59 = vld [vmem:[#allocation23 + $0x28] sm:$0xff] }
 0x2e0   :  { %1311 = vmatprep.mubr.msk.bf16.mxu0 %vm180_vm1, %v546_v54  ;;  %v930_v63 = vmul.f32 %v1915_v42, %v1996_v59 }
 0x2e1   :  { %1312 = vmatmul.mubr.msk.bf16.vlgmr.msra.gmra.mxu0 %vm180_vm1, %v547_v57  ;;  %v2002_v1 = vld [vmem:[#allocation23 + $0x18] sm:$0xff]  ;;  %v902_v57 = vld [vmem:[#allocation14 + $0x10] sm:$0xff] }
 0x2e2   :  { %1324 = vmatpush3.bf16.msra.mxu0 %v545_v56  ;;  %v937_v2 = vsel %vm180_vm1, %v930_v63, 0.0  ;;  %v928_v4 = vmul.f32 %v1915_v42, %v2002_v1  ;;  %1327 = vmatprep.mubr.msk.bf16.mxu0 %vm1730_vm0, %v1729_v0  ;;  %v758_v63 = vld [vmem:[#allocation13 + $0x18] sm:$0xff] }
 0x2e3   :  { %938 = vadd.xlane.f32.xlu1 %v937_v2  ;;  %1325 = vmatprep.subr.bf16.mxu0 %v1729_v0  ;;  %v900_v2 = vld [vmem:[#allocation14] sm:$0xff] }
 0x2e4   :  { %v931_v6 = vsel %vm180_vm1, %v928_v4, 0.0  ;;  %v850_v4 = vpack.c.bf16 %v758_v63, %v757_v61 }
 0x2e5   :  { %v2010_v5 = vld [vmem:[#allocation23 + $0x20] sm:$0xff] }
 0x2e6   :  { %1326 = vmatpush3.bf16.msra.mxu0 %v544_v3  ;;  %v929_v7 = vmul.f32 %v1915_v42, %v2010_v5  ;;  %v901_v3 = vld [vmem:[#allocation14 + $0x8] sm:$0xff] }
 0x2e7   :  { %932 = vadd.xlane.f32.xlu1 %v931_v6  ;;  %1337 = vmatprep.subr.bf16.mxu0 %v1729_v0  ;;  %v1032_v6 = vpack.c.bf16 %v901_v3, %v900_v2 }
 0x2e8   :  { %v934_v9 = vsel %vm180_vm1, %v929_v7, 0.0  ;;  %v756_v7 = vld [vmem:[#allocation13 + $0x8] sm:$0xff] }
 0x2e9   :  { %1328 = vmatmul.mubr.msk.bf16.vlgmr.msra.gmra.mxu0 %vm180_vm1, %v650_v8 }
 0x2ea   :  { %1341 = vmatprep.mubr.msk.bf16.mxu0 %vm1730_vm0, %v1729_v0  ;;  %1338 = vmatpush3.bf16.msra.mxu0 %v850_v4 }
 0x2eb   :  { %935 = vadd.xlane.f32.xlu1 %v934_v9  ;;  %1339 = vmatprep.subr.bf16.mxu0 %v1729_v0  ;;  %v924_v9 = vpop.xlane.xlu0 %923 }
 0x3a1   :  { %v1313_v10 = vpop.f32.mrf.mxu0 }
 0x3a2   :  { %v603_v11 = vpack.c.bf16 %v1313_v10, %v1313_v10  ;;  %v918_v10 = vpop.xlane.xlu0 %917 }
 0x3a3   :  { %v588_v12 = vpop.f32.mrf.mxu0 }
 0x3a4   :  { %v605_v13 = vsel %vm374_vm2, %v603_v11, 0  ;;  %v771_v11 = vpop.xlane.xlu1 %770 }
 0x3a5   :  { %v1314_v14 = vpop.f32.mrf.mxu0  ;;  %1316 = vmatpush3.bf16.msra.mxu1 %v605_v13 }
 0x3a6   :  { %1317 = vmatprep.subr.bf16.mxu1 %v1729_v0 }
 0x3a7   :  { %v591_v17 = vpop.f32.mrf.mxu0 }
 0x3a8   :  { %v602_v18 = vpack.c.bf16 %v591_v17, %v588_v12  ;;  %v774_v12 = vpop.xlane.xlu0 %773  ;;  %v781_v13 = vpop.xlane.xlu1 %780 }
 0x3a9   :  { %v688_v19 = vpop.f32.mrf.mxu0 }
 0x3aa   :  { %1318 = vmatpush3.bf16.msra.mxu1 %v602_v18 }
 0x3ab   :  { %v1329_v20 = vpop.f32.mrf.mxu0 }
 0x3ac   :  { %v939_v14 = vpop.xlane.xlu1 %938  ;;  %v921_v17 = vpop.xlane.xlu0 %920 }
 0x3ad   :  { %1320 = vmatmul.mubr.msk.bf16.vlgmr.msra.gmra.mxu1 %vm370_vm3, %v1962_v15  ;;  %v691_v21 = vpop.f32.mrf.mxu0  ;;  %v957_v20 = vmax.f32 %v924_v9, %v939_v14 }
 0x3ae   :  { %v695_v23 = vpack.c.bf16 %v691_v21, %v688_v19  ;;  %1333 = vmatprep.mubr.msk.bf16.mxu1 %vm467_vm4, %v1964_v16 }
 0x3af   :  { %v1330_v24 = vpop.f32.mrf.mxu0 }
 0x3b0   :  { %1331 = vmatprep.subr.bf16.mxu1 %v695_v23  ;;  %v784_v18 = vpop.xlane.xlu0 %783  ;;  %v933_v19 = vpop.xlane.xlu1 %932 }
 0x3b1   :  { %1332 = vmatpush3.bf16.msra.mxu1 %v695_v23 }
 0x3b4   :  { %v936_v24 = vpop.xlane.xlu1 %935 }
 0x3b5   :  { %1334 = vmatmul.mubr.msk.bf16.vlgmr.msra.gmra.mxu1 %vm467_vm4, %v1973_v22 }
 0x46d   :  { %v641_v25 = vpop.f32.mrf.mxu1 }
 0x46e   :  { %v648_v26 = vmax.f32 %v641_v25, 0.0  ;;  %v955_v25 = vmax.f32 %v918_v10, %v933_v19 }
 0x46f   :  { %v1321_v27 = vpop.f32.mrf.mxu1 }
 0x470   :  { %748 = vst.msk [vmem:[#allocation22 + $0x20] sm:$0xff] %vm180_vm1, %v648_v26 }
 0x471   :  { %v644_v28 = vpop.f32.mrf.mxu1 }
 0x472   :  { %v649_v29 = vmax.f32 %v644_v28, 0.0 }
 0x473   :  { %v1322_v30 = vpop.f32.mrf.mxu1 }
 0x474   :  { %749 = vst.msk [vmem:[#allocation22 + $0x28] sm:$0xff] %vm180_vm1, %v649_v29 }
 0x475   :  { %v1335_v15 = vpop.f32.mrf.mxu1 }
 0x476   :  { %v746_v31 = vmax.f32 %v1335_v15, 0.0 }
 0x477   :  { %v730_v32 = vpop.f32.mrf.mxu1  ;;  %v2046_v44 = vld [vmem:[#allocation22 + $0x20] sm:$0xff] }
 0x478   :  { %753 = vst.msk [vmem:[#allocation23 + $0x40] sm:$0xff] %vm180_vm1, %v746_v31  ;;  %v744_v16 = vmax.f32 %v730_v32, 0.0  ;;  %v787_v54 = vmul.f32 %v1923_v49, %v2046_v44  ;;  %v956_v32 = vmax.f32 %v921_v17, %v936_v24 }
 0x479   :  { %v1336_v33 = vpop.f32.mrf.mxu1 }
 0x47a   :  { %751 = vst.msk [vmem:[#allocation23 + $0x30] sm:$0xff] %vm180_vm1, %v744_v16  ;;  %v789_v56 = vsel %vm180_vm1, %v787_v54, 0.0 }
 0x47b   :  { %v733_v22 = vpop.f32.mrf.mxu1  ;;  %v2042_v41 = vld [vmem:[#allocation22 + $0x28] sm:$0xff] }
 0x47c   :  { %v745_v34 = vmax.f32 %v733_v22, 0.0  ;;  %v788_v51 = vmul.f32 %v1923_v49, %v2042_v41  ;;  %v755_v49 = vld [vmem:[#allocation13] sm:$0xff] }
 0x47d   :  { %v849_v8 = vpack.c.bf16 %v756_v7, %v755_v49 }
 0x47e   :  { %752 = vst.msk [vmem:[#allocation23 + $0x38] sm:$0xff] %vm180_vm1, %v745_v34  ;;  %v792_v55 = vsel %vm180_vm1, %v788_v51, 0.0 }
 0x47f   :  { %v2033_v35 = vld [vmem:[#allocation23 + $0x40] sm:$0xff]  ;;  %1340 = vmatpush3.bf16.msra.mxu0 %v849_v8 }
 0x480   :  { %v945_v36 = vmul.f32 %v1915_v42, %v2033_v35 }
 0x481   :  { %v2037_v37 = vld [vmem:[#allocation23 + $0x30] sm:$0xff] }
 0x482   :  { %v952_v39 = vsel %vm180_vm1, %v945_v36, 0.0  ;;  %v943_v40 = vmul.f32 %v1915_v42, %v2037_v37  ;;  %v795_v36 = vmax.f32 %v771_v11, %v781_v13 }
 0x483   :  { %953 = vadd.xlane.f32.xlu0 %v952_v39  ;;  %v796_v39 = vmax.f32 %v774_v12, %v784_v18 }
 0x484   :  { %v946_v46 = vsel %vm180_vm1, %v943_v40, 0.0 }
 0x485   :  { %v2044_v43 = vld [vmem:[#allocation23 + $0x38] sm:$0xff] }
 0x486   :  { %v944_v47 = vmul.f32 %v1915_v42, %v2044_v43  ;;  %v1033_v42 = vpack.c.bf16 %v903_v60, %v902_v57 }
 0x487   :  { %947 = vadd.xlane.f32.xlu0 %v946_v46 }
 0x488   :  { %v949_v52 = vsel %vm180_vm1, %v944_v47, 0.0  ;;  %1345 = vmatprep.subr.bf16.mxu1 %v1033_v42 }
 0x489   :  { %950 = vadd.xlane.f32.xlu1 %v949_v52  ;;  %1346 = vmatpush3.bf16.msra.mxu1 %v1033_v42 }
 0x48a   :  { %1347 = vmatprep.subr.bf16.mxu1 %v1032_v6 }
 0x48b   :  { %793 = vadd.xlane.f32.xlu0 %v792_v55 }
 0x48d   :  { %790 = vadd.xlane.f32.xlu1 %v789_v56  ;;  %1348 = vmatpush3.bf16.msra.mxu1 %v1032_v6 }
 0x50c   :  { %v954_v21 = vpop.xlane.xlu0 %953 }
 0x50d   :  { %v960_v23 = vmax.f32 %v957_v20, %v954_v21 }
 0x50f   :  { %v963_v0 = vsub.f32 %v924_v9, %v960_v23  ;;  %v975_v26 = vsub.f32 %v939_v14, %v960_v23  ;;  %v993_v27 = vsub.f32 %v954_v21, %v960_v23 }
 0x510   :  { %v948_v28 = vpop.xlane.xlu0 %947 }
 0x511   :  { %v968_v29 = vmul.f32 1.442695, %v963_v0  ;;  %v980_v30 = vmul.f32 1.442695, %v975_v26  ;;  %v998_v15 = vmul.f32 1.442695, %v993_v27  ;;  %v958_v31 = vmax.f32 %v955_v25, %v948_v28 }
 0x512   :  { %v951_v16 = vpop.xlane.xlu1 %950 }
 0x513   :  { %1371 = vpow2.f32 %v968_v29  ;;  %v961_v33 = vsub.f32 %v918_v10, %v958_v31  ;;  %v973_v22 = vsub.f32 %v933_v19, %v958_v31  ;;  %v991_v34 = vsub.f32 %v948_v28, %v958_v31 }
 0x514   :  { %1373 = vpow2.f32 %v980_v30  ;;  %v959_v40 = vmax.f32 %v956_v32, %v951_v16  ;;  %v794_v46 = vpop.xlane.xlu0 %793 }
 0x515   :  { %1375 = vpow2.f32 %v998_v15  ;;  %v964_v47 = vmul.f32 1.442695, %v961_v33  ;;  %v976_v51 = vmul.f32 1.442695, %v973_v22  ;;  %v994_v52 = vmul.f32 1.442695, %v991_v34 }
 0x516   :  { %v962_v54 = vsub.f32 %v921_v17, %v959_v40  ;;  %v974_v55 = vsub.f32 %v936_v24, %v959_v40  ;;  %v992_v56 = vsub.f32 %v951_v16, %v959_v40  ;;  %v798_v57 = vmax.f32 %v796_v39, %v794_v46  ;;  %v791_v60 = vpop.xlane.xlu1 %790 }
 0x517   :  { %1377 = vpow2.f32 %v964_v47  ;;  %v797_v61 = vmax.f32 %v795_v36, %v791_v60 }
 0x518   :  { %1379 = vpow2.f32 %v976_v51  ;;  %v966_v42 = vmul.f32 1.442695, %v962_v54  ;;  %v978_v63 = vmul.f32 1.442695, %v974_v55  ;;  %v996_v2 = vmul.f32 1.442695, %v992_v56 }
 0x519   :  { %1381 = vpow2.f32 %v994_v52  ;;  %v800_v3 = vsub.f32 %v774_v12, %v798_v57  ;;  %v808_v4 = vsub.f32 %v784_v18, %v798_v57  ;;  %v820_v6 = vsub.f32 %v794_v46, %v798_v57 }
 0x51a   :  { %1383 = vpow2.f32 %v966_v42  ;;  %v799_v49 = vsub.f32 %v771_v11, %v797_v61  ;;  %v807_v7 = vsub.f32 %v781_v13, %v797_v61  ;;  %v819_v8 = vsub.f32 %v791_v60, %v797_v61 }
 0x51b   :  { %1385 = vpow2.f32 %v978_v63  ;;  %v803_v9 = vmul.f32 1.442695, %v800_v3  ;;  %v811_v10 = vmul.f32 1.442695, %v808_v4  ;;  %v823_v14 = vmul.f32 1.442695, %v820_v6 }
 0x51c   :  { %1387 = vpow2.f32 %v996_v2  ;;  %v801_v17 = vmul.f32 1.442695, %v799_v49  ;;  %v809_v19 = vmul.f32 1.442695, %v807_v7  ;;  %v821_v20 = vmul.f32 1.442695, %v819_v8 }
 0x51d   :  { %1389 = vpow2.f32 %v803_v9 }
 0x51e   :  { %1391 = vpow2.f32 %v811_v10 }
 0x51f   :  { %1393 = vpow2.f32 %v823_v14 }
 0x520   :  { %v1372_v21 = vpop.eup %1371  ;;  %1395 = vpow2.f32 %v801_v17 }
 0x521   :  { %v1374_v12 = vpop.eup %1373  ;;  %1397 = vpow2.f32 %v809_v19  ;;  %v972_v16 = vmul.f32 %v1372_v21, %v1918_v48 }
 0x522   :  { %v1376_v18 = vpop.eup %1375  ;;  %v984_v23 = vadd.f32 %v1374_v12, %v1372_v21  ;;  %1399 = vpow2.f32 %v821_v20  ;;  %v987_v33 = vmul.f32 %v1374_v12, %v1996_v59  ;;  %v1020_v55 = vsel %vm837_vm5, %v1372_v21, %v1374_v12 }
 0x523   :  { %v1005_v56 = vmul.f32 %v1376_v18, %v2033_v35  ;;  %v1023_v42 = vsel %vm840_vm6, %v1020_v55, %v1376_v18 }
 0x524   :  { %v1378_v11 = vpop.eup %1377  ;;  %v1002_v13 = vadd.f32 %v1376_v18, %v984_v23  ;;  %v990_v51 = vadd.f32 %v987_v33, %v972_v16 }
 0x525   :  { %v1380_v24 = vpop.eup %1379  ;;  %v970_v40 = vmul.f32 %v1378_v11, %v1933_v53 }
 0x526   :  { %v1382_v25 = vpop.eup %1381  ;;  %v982_v0 = vadd.f32 %v1380_v24, %v1378_v11  ;;  %1401 = vrcp.f32 %v1002_v13  ;;  %v985_v46 = vmul.f32 %v1380_v24, %v2002_v1  ;;  %v1018_v53 = vsel %vm837_vm5, %v1378_v11, %v1380_v24 }
 0x527   :  { %v1384_v26 = vpop.eup %1383  ;;  %v1008_v1 = vadd.f32 %v1005_v56, %v990_v51  ;;  %v1003_v63 = vmul.f32 %v1382_v25, %v2037_v37  ;;  %v1021_v35 = vsel %vm840_vm6, %v1018_v53, %v1382_v25 }
 0x528   :  { %v1386_v27 = vpop.eup %1385  ;;  %v1000_v28 = vadd.f32 %v1382_v25, %v982_v0  ;;  %v971_v48 = vmul.f32 %v1384_v26, %v1947_v62  ;;  %v988_v60 = vadd.f32 %v985_v46, %v970_v40 }
 0x529   :  { %v1388_v29 = vpop.eup %1387  ;;  %v983_v30 = vadd.f32 %v1386_v27, %v1384_v26  ;;  %v986_v59 = vmul.f32 %v1386_v27, %v2010_v5  ;;  %v1019_v7 = vsel %vm837_vm5, %v1384_v26, %v1386_v27 }
 0x52a   :  { %v1390_v15 = vpop.eup %1389  ;;  %1403 = vrcp.f32 %v1000_v28  ;;  %v1006_v6 = vadd.f32 %v1003_v63, %v988_v60  ;;  %v1004_v8 = vmul.f32 %v1388_v29, %v2044_v43  ;;  %v1022_v19 = vsel %vm840_vm6, %v1019_v7, %v1388_v29 }
 0x52b   :  { %v1392_v31 = vpop.eup %1391  ;;  %v1001_v32 = vadd.f32 %v1388_v29, %v983_v30  ;;  %v806_v2 = vmul.f32 %v1390_v15, %v1942_v58  ;;  %v989_v3 = vadd.f32 %v986_v59, %v971_v48 }
 0x52c   :  { %v1394_v22 = vpop.eup %1393  ;;  %v814_v34 = vadd.f32 %v1392_v31, %v1390_v15  ;;  %v816_v62 = vmul.f32 %v1392_v31, %v1990_v45  ;;  %v839_v43 = vsel %vm837_vm5, %v1390_v15, %v1392_v31 }
 0x52d   :  { %v1396_v36 = vpop.eup %1395  ;;  %1405 = vrcp.f32 %v1001_v32  ;;  %v1007_v14 = vadd.f32 %v1004_v8, %v989_v3  ;;  %v842_v23 = vsel %vm840_vm6, %v839_v43, %v1394_v22 }
 0x52e   :  { %v1398_v39 = vpop.eup %1397  ;;  %v826_v47 = vadd.f32 %v1394_v22, %v814_v34  ;;  %v805_v58 = vmul.f32 %v1396_v36, %v1925_v50  ;;  %v818_v10 = vadd.f32 %v816_v62, %v806_v2  ;;  %v828_v50 = vmul.f32 %v1394_v22, %v2042_v41 }
 0x52f   :  { %v813_v52 = vadd.f32 %v1398_v39, %v1396_v36  ;;  %v1400_v54 = vpop.eup %1399  ;;  %v815_v45 = vmul.f32 %v1398_v39, %v1983_v38  ;;  %v838_v11 = vsel %vm837_vm5, %v1396_v36, %v1398_v39 }
 0x530   :  { %1407 = vrcp.f32 %v826_v47  ;;  %v830_v12 = vadd.f32 %v828_v50, %v818_v10  ;;  %v827_v24 = vmul.f32 %v1400_v54, %v2046_v44  ;;  %v841_v28 = vsel %vm840_vm6, %v838_v11, %v1400_v54 }
 0x531   :  { %v825_v57 = vadd.f32 %v1400_v54, %v813_v52  ;;  %v817_v21 = vadd.f32 %v815_v45, %v805_v58 }
 0x533   :  { %1409 = vrcp.f32 %v825_v57  ;;  %v1402_v61 = vpop.eup %1401  ;;  %v829_v26 = vadd.f32 %v827_v24, %v817_v21 }
 0x534   :  { %v1014_v5 = vmul.f32 %v1402_v61, %v1008_v1  ;;  %v1026_v4 = vmul.f32 %v1402_v61, %v1023_v42 }
 0x536   :  { %1029 = vst.msk [vmem:[%s2177_s17 + $0x10] sm:$0xff] %vm845_vm7, %v1026_v4  ;;  %v1031_v41 = vpack.c.bf16 %v1014_v5, %v1014_v5 }
 0x537   :  { %v1404_v49 = vpop.eup %1403  ;;  %1017 = vst.msk [vmem:[#allocation20 + $0x10] sm:$0xff] %vm180_vm1, %v1014_v5 }
 0x538   :  { %v1012_v37 = vmul.f32 %v1404_v49, %v1006_v6  ;;  %v1024_v9 = vmul.f32 %v1404_v49, %v1021_v35 }
 0x53a   :  { %v1406_v17 = vpop.eup %1405  ;;  %1027 = vst.msk [vmem:[%s2177_s17] sm:$0xff] %vm845_vm7, %v1024_v9 }
 0x53b   :  { %1015 = vst.msk [vmem:[#allocation20] sm:$0xff] %vm180_vm1, %v1012_v37  ;;  %v1013_v20 = vmul.f32 %v1406_v17, %v1007_v14  ;;  %v1025_v38 = vmul.f32 %v1406_v17, %v1022_v19 }
 0x53d   :  { %v1408_v18 = vpop.eup %1407  ;;  %1028 = vst.msk [vmem:[%s2177_s17 + $0x8] sm:$0xff] %vm845_vm7, %v1025_v38  ;;  %v1030_v13 = vpack.c.bf16 %v1013_v20, %v1012_v37 }
 0x53e   :  { %1016 = vst.msk [vmem:[#allocation20 + $0x8] sm:$0xff] %vm180_vm1, %v1013_v20  ;;  %v834_v25 = vmul.f32 %v1408_v18, %v830_v12  ;;  %v844_v0 = vmul.f32 %v1408_v18, %v842_v23 }
 0x53f   :  { %1349 = vmatprep.mubr.msk.bf16.mxu1 %vm180_vm1, %v1030_v13 }
 0x540   :  { %v1410_v27 = vpop.eup %1409  ;;  %1350 = vmatmul.mubr.msk.bf16.vlgmr.msra.gmra.mxu1 %vm180_vm1, %v1031_v41  ;;  %847 = vst.msk [vmem:[%s2176_s16 + $0x8] sm:$0xff] %vm845_vm7, %v844_v0 }
 0x541   :  { %836 = vst.msk [vmem:[#allocation19 + $0x8] sm:$0xff] %vm180_vm1, %v834_v25  ;;  %v833_v29 = vmul.f32 %v1410_v27, %v829_v26  ;;  %v843_v44 = vmul.f32 %v1410_v27, %v841_v28 }
 0x543   :  { %846 = vst.msk [vmem:[%s2176_s16] sm:$0xff] %vm845_vm7, %v843_v44  ;;  %v848_v30 = vpack.c.bf16 %v834_v25, %v833_v29 }
 0x544   :  { %835 = vst.msk [vmem:[#allocation19] sm:$0xff] %vm180_vm1, %v833_v29 }
 0x545   :  { %1342 = vmatmul.mubr.msk.bf16.vlgmr.msra.gmra.mxu0 %vm180_vm1, %v848_v30 }
 0x546   :  { %1592 = shalt.err (!%p1589_p2)
}
 0x547   :  { %1141 = dma.vmem_to_hbm [thread:$0]  %s1136_s4, 384, %s2175_s15, [#allocation21], %s1721_s22, %s1721_s22, %s1722_s2  }
 0x548   :  { %s1732_s24 = smov [#allocation22]   ;;  %s1733_s9 = smov [#allocation23]  }
 0x549   :  { %s1151_s8 = sshll.u32 %s1732_s24, 4  ;;  %s1163_s25 = sshll.u32 %s1733_s9, 4  ;;  %s1152_s8 = int_to_ptr.vmem [resolvable:$true] %s1151_s8  ;;  %s1164_s25 = int_to_ptr.vmem [resolvable:$true] %s1163_s25 }
 0x54a   :  { %s1601_s3 = scalar_lea.vmem %s1152_s8, 768  ;;  %p1606_p4 = scmp.lt.s32.totalorder %s1152_s8, %s1152_s8 }
 0x54b   :  { %p1602_p3 = scmp.ne.s32.totalorder %s1152_s8, %s1601_s3  ;;  %p1607_p5 = scmp.lt.s32.totalorder %s1601_s3, %s1601_s3 }
 0x54d   :  { %p1608_p6 = por %p1607_p5, %p1606_p4 }
 0x54f   :  { %p1609_p7 = pnand %p1608_p6, %p1602_p3 }
 0x551   :  { %1612 = shalt.err (!%p1609_p7)
}
 0x552   :  { %1157 = dma.vmem_to_hbm [thread:$0]  %s1152_s8, 768, %s2178_s18, [#allocation21], %s1721_s22, %s1721_s22, %s1722_s2  }
 0x553   :  { %s1621_s15 = scalar_lea.vmem %s1164_s25, 1152  ;;  %p1626_p9 = scmp.lt.s32.totalorder %s1164_s25, %s1164_s25 }
 0x554   :  { %p1622_p8 = scmp.ne.s32.totalorder %s1164_s25, %s1621_s15  ;;  %p1627_p10 = scmp.lt.s32.totalorder %s1621_s15, %s1621_s15 }
 0x556   :  { %p1628_p11 = por %p1627_p10, %p1626_p9 }
 0x558   :  { %p1629_p12 = pnand %p1628_p11, %p1622_p8 }
 0x55a   :  { %1632 = shalt.err (!%p1629_p12)
}
 0x55b   :  { %1169 = dma.vmem_to_hbm [thread:$0]  %s1164_s25, 1152, %s2179_s19, [#allocation24], %s1721_s22, %s1721_s22, %s1722_s2  }
 0x55c   :  { %s1734_s18 = smov [#allocation17]   ;;  %s1735_s19 = smov [#allocation19]  }
 0x55d   :  { %s1111_s7 = sshll.u32 %s1734_s18, 4  ;;  %s1123_s10 = sshll.u32 %s1735_s19, 4  ;;  %s1112_s7 = int_to_ptr.vmem [resolvable:$true] %s1111_s7  ;;  %s1124_s10 = int_to_ptr.vmem [resolvable:$true] %s1123_s10 }
 0x55e   :  { %s1736_s11 = smov [#allocation16]   ;;  %s1641_s0 = scalar_lea.vmem %s1112_s7, 384 }
 0x55f   :  { %s1099_s29 = sshll.u32 %s1736_s11, 4  ;;  %p1642_p13 = scmp.ne.s32.totalorder %s1112_s7, %s1641_s0  ;;  %s2134_s29 = int_to_ptr.vmem [resolvable:$true] %s1099_s29 }
 0x560   :  { %p1646_p0 = scmp.lt.s32.totalorder %s1112_s7, %s1112_s7  ;;  %p1647_p1 = scmp.lt.s32.totalorder %s1641_s0, %s1641_s0 }
 0x562   :  { %p1648_p2 = por %p1647_p1, %p1646_p0 }
 0x564   :  { %p1649_p3 = pnand %p1648_p2, %p1642_p13 }
 0x600   :  { %v1351_v15 = vpop.f32.mrf.mxu1 }
 0x601   :  { %1411 = vtanh.f32 %v1351_v15 }
 0x602   :  { %v1074_v31 = vpop.f32.mrf.mxu1 }
 0x603   :  { %1413 = vtanh.f32 %v1074_v31 }
 0x604   :  { %v1352_v32 = vpop.f32.mrf.mxu1 }
 0x605   :  { %v888_v16 = vpop.f32.mrf.mxu0 }
 0x606   :  { %1415 = vtanh.f32 %v888_v16  ;;  %v1077_v33 = vpop.f32.mrf.mxu1 }
 0x607   :  { %v1343_v22 = vpop.f32.mrf.mxu0  ;;  %1417 = vtanh.f32 %v1077_v33 }
 0x609   :  { %v891_v34 = vpop.f32.mrf.mxu0 }
 0x60a   :  { %1419 = vtanh.f32 %v891_v34 }
 0x60b   :  { %v1344_v36 = vpop.f32.mrf.mxu0 }
 0x60e   :  { %v1412_v39 = vpop.eup %1411 }
 0x60f   :  { %1093 = vst.msk [vmem:[#allocation17 + $0x10] sm:$0xff] %vm180_vm1, %v1412_v39 }
 0x610   :  { %v1414_v40 = vpop.eup %1413 }
 0x611   :  { %1091 = vst.msk [vmem:[#allocation17] sm:$0xff] %vm180_vm1, %v1414_v40 }
 0x613   :  { %v1416_v46 = vpop.eup %1415 }
 0x614   :  { %v1418_v47 = vpop.eup %1417  ;;  %897 = vst.msk [vmem:[#allocation16] sm:$0xff] %vm180_vm1, %v1416_v46 }
 0x615   :  { %1092 = vst.msk [vmem:[#allocation17 + $0x8] sm:$0xff] %vm180_vm1, %v1418_v47 }
 0x616   :  { %1652 = shalt.err (!%p1649_p3)
}
 0x617   :  { %1117 = dma.vmem_to_hbm [thread:$0]  %s1112_s7, 384, %s2173_s13, [#allocation18], %s1721_s22, %s1721_s22, %s1722_s2   ;;  %v1420_v51 = vpop.eup %1419 }
 0x618   :  { %s1661_s17 = scalar_lea.vmem %s1124_s10, 256  ;;  %p1666_p5 = scmp.lt.s32.totalorder %s1124_s10, %s1124_s10 }
 0x619   :  { %p1662_p4 = scmp.ne.s32.totalorder %s1124_s10, %s1661_s17  ;;  %p1667_p6 = scmp.lt.s32.totalorder %s1661_s17, %s1661_s17 }
 0x61b   :  { %p1668_p7 = por %p1667_p6, %p1666_p5 }
 0x61d   :  { %p1669_p8 = pnand %p1668_p7, %p1662_p4 }
 0x61f   :  { %1672 = shalt.err (!%p1669_p8)
}
 0x620   :  { %1129 = dma.vmem_to_hbm [thread:$0]  %s1124_s10, 256, %s2174_s14, [#allocation18], %s1721_s22, %s1721_s22, %s1722_s2   ;;  %898 = vst.msk [vmem:[#allocation16 + $0x8] sm:$0xff] %vm180_vm1, %v1420_v51 }
 0x621   :  { %s1681_s13 = scalar_lea.vmem %s2134_s29, 256  ;;  %p1686_p10 = scmp.lt.s32.totalorder %s2134_s29, %s2134_s29 }
 0x622   :  { %p1682_p9 = scmp.ne.s32.totalorder %s2134_s29, %s1681_s13  ;;  %p1687_p11 = scmp.lt.s32.totalorder %s1681_s13, %s1681_s13 }
 0x624   :  { %p1688_p12 = por %p1687_p11, %p1686_p10 }
 0x626   :  { %p1689_p13 = pnand %p1688_p12, %p1682_p9 }
 0x628   :  { %1692 = shalt.err (!%p1689_p13)
}
 0x629   :  { %1105 = dma.vmem_to_hbm [thread:$0]  %s2134_s29, 256, %s2172_s12, [#allocation4], %s1721_s22, %s1721_s22, %s1722_s2  }
 0x62a   :  { %1711 = dma.done.wait [#allocation4], 256  }
 0x62b   :  { %1712 = vsyncadd [#allocation4], 4294967040 }
 0x62c   :  { %1713 = dma.done.wait [#allocation18], 640  }
 0x62d   :  { %1714 = vsyncadd [#allocation18], 4294966656 }
 0x62e   :  { %1715 = dma.done.wait [#allocation21], 1152  }
 0x62f   :  { %1716 = vsyncadd [#allocation21], 4294966144 }
 0x630   :  { %1717 = dma.done.wait [#allocation24], 1152  }
 0x631   :  { %1718 = vsyncadd [#allocation24], 4294966144 }
 0x632   :  { %1192 = vsyncpa [#allocation3], 1 }
 0x633   :  { %1193 = vsyncpa [#allocation6], 1 }
 0x634   :  { %1194 = vsyncpa [#allocation9], 1 }
 0x635   :  { %1195 = vsyncpa [#allocation12], 1 }
 0x636   :  { %1196 = vsyncpa [#allocation15], 1 }
 0x637   :  { %1197 = vsyncpa [#allocation4], 1 }
 0x638   :  { %1198 = vsyncpa [#allocation18], 1 }
 0x639   :  { %1199 = vsyncpa [#allocation21], 1 }
 0x63a   :  { %1200 = vsyncpa [#allocation24], 1 }

</bundles_post_ra>
